<compile_context>
chip_gen: v7x
topology: tpu7x:2x2x1
jax: 0.10.0
libtpu: 0.0.40
codegen_flags: <defaults>
</compile_context>

<pallas_src>
from functools import partial

import jax
import jax.numpy as jnp
from jax.experimental import pallas as pl
from jax.experimental.pallas import tpu as pltpu


# ----------------------------------------------------------------------------
# Kernels
# ----------------------------------------------------------------------------
def _fa_accumulate(a_ref, b_ref, adj_ref, drow_ref, hsrc_ref, acc_ref, compute_dtype):
    """One (dst-tile, src-tile) step: gate + masked edge weights + MXU matmul."""
    k = pl.program_id(1)

    @pl.when(k == 0)
    def _():
        acc_ref[...] = jnp.zeros_like(acc_ref)

    gate = jnp.tanh(a_ref[...] + b_ref[...])                        # (tn, tk) f32, EUP
    # e_ij = gate * d_j, masked by adjacency (adj is exact 0/1 in bf16).
    e = (gate * drow_ref[...]).astype(compute_dtype) * adj_ref[...].astype(compute_dtype)
    acc_ref[...] += jnp.dot(e, hsrc_ref[...],
                            preferred_element_type=jnp.float32)     # (tn, D) f32 acc


def fa_layer_kernel(a_ref, b_ref, adj_ref, dcol_ref, drow_ref, hsrc_ref,
                    raweps_ref, out_ref, acc_ref, *, compute_dtype):
    _fa_accumulate(a_ref, b_ref, adj_ref, drow_ref, hsrc_ref, acc_ref, compute_dtype)

    @pl.when(pl.program_id(1) == pl.num_programs(1) - 1)
    def _():
        out_ref[...] = raweps_ref[...] + acc_ref[...] * dcol_ref[...]


def fa_layer_out_kernel(a_ref, b_ref, adj_ref, dcol_ref, drow_ref, hsrc_ref,
                        raweps_ref, w2_ref, b2_ref, out_ref, acc_ref, *, compute_dtype):
    """Last FALayer with the final t2 Linear fused in (lane-padded outputs)."""
    _fa_accumulate(a_ref, b_ref, adj_ref, drow_ref, hsrc_ref, acc_ref, compute_dtype)

    @pl.when(pl.program_id(1) == pl.num_programs(1) - 1)
    def _():
        h_new = raweps_ref[...] + acc_ref[...] * dcol_ref[...]
        out_ref[...] = (jnp.dot(h_new.astype(compute_dtype), w2_ref[...],
                                preferred_element_type=jnp.float32) + b2_ref[...])


# ----------------------------------------------------------------------------
# Wrapper
# ----------------------------------------------------------------------------
def fagcn_forward(h_in, adj, params, *, eps=0.3, layer_num=2,
                  tile_n=128, tile_k=512, compute_dtype=jnp.bfloat16):
    N, D = h_in.shape
    out_dim = params['w2'].shape[1]
    tile_n = min(tile_n, N)
    tile_k = min(tile_k, N)
    assert N % tile_n == 0 and N % tile_k == 0
    assert tile_n % 8 == 0 and tile_k % 128 == 0 and D % 128 == 0
    hp = jax.lax.Precision.HIGHEST

    # Graph preprocessing (g.ndata['d'] in the original script).
    adj = adj.astype(jnp.float32)
    deg = jnp.maximum(jnp.sum(adj, axis=1), 1.0)
    d = (deg ** -0.5).astype(jnp.float32)
    d_col = d.reshape(N, 1)
    d_row = d.reshape(1, N)
    adj_c = adj.astype(jnp.bfloat16)          # 0/1 exact; halves adj HBM traffic & VMEM

    # Hoisted layer-0 relu and the eps*raw residual term (shared by all layers).
    h0 = jnp.maximum(h_in, 0.0).astype(jnp.float32)
    raw_eps = eps * h0

    # Final t2 Linear, lane-padded to a multiple of 128 output lanes.
    out_p = ((out_dim + 127) // 128) * 128
    w2_p = (jnp.zeros((D, out_p), jnp.float32)
            .at[:, :out_dim].set(params['w2'].astype(jnp.float32))
            .astype(compute_dtype))
    b2_p = jnp.zeros((1, out_p), jnp.float32).at[:, :out_dim].set(
        params['b2'].astype(jnp.float32))

    grid = (N // tile_n, N // tile_k)

    def layer_specs():
        return [
            pl.BlockSpec((tile_n, 1),      lambda i, k: (i, 0)),  # a: dst gate score
            pl.BlockSpec((1, tile_k),      lambda i, k: (0, k)),  # b: src gate score + bias
            pl.BlockSpec((tile_n, tile_k), lambda i, k: (i, k)),  # adjacency tile (bf16)
            pl.BlockSpec((tile_n, 1),      lambda i, k: (i, 0)),  # d (dst column)
            pl.BlockSpec((1, tile_k),      lambda i, k: (0, k)),  # d (src row)
            pl.BlockSpec((tile_k, D),      lambda i, k: (k, 0)),  # h source tile
            pl.BlockSpec((tile_n, D),      lambda i, k: (i, 0)),  # eps * relu(h_in) tile
        ]

    cparams = pltpu.CompilerParams(
        dimension_semantics=("parallel", "arbitrary"),
        vmem_limit_bytes=32 * 1024 * 1024)
    cost = pl.CostEstimate(
        flops=2 * N * N * D,
        transcendentals=N * N,
        bytes_accessed=N * N * 2 + 4 * N * D * 4)

    h = h0
    out = None
    for l in range(layer_num):
        wg = params['gate_w'][l].astype(jnp.float32)               # (2, D)
        bg = params['gate_b'][l].astype(jnp.float32)               # (1, 1)
        # Hoisted per-layer gate scores: one tiny matmul each, not once per tile.
        a_col = jnp.dot(h, wg[0], precision=hp).reshape(N, 1)
        b_row = (jnp.dot(h, wg[1], precision=hp) + bg[0, 0]).reshape(1, N)
        h_src = h.astype(compute_dtype)                            # MXU operand copy
        last = (l == layer_num - 1)

        if not last:
            h = pl.pallas_call(
                partial(fa_layer_kernel, compute_dtype=compute_dtype),
                out_shape=jax.ShapeDtypeStruct((N, D), jnp.float32),
                grid_spec=pltpu.PrefetchScalarGridSpec(
                    num_scalar_prefetch=0, grid=grid,
                    in_specs=layer_specs(),
                    out_specs=pl.BlockSpec((tile_n, D), lambda i, k: (i, 0)),
                    scratch_shapes=[pltpu.VMEM((tile_n, D), jnp.float32)]),
                compiler_params=cparams, cost_estimate=cost,
            )(a_col, b_row, adj_c, d_col, d_row, h_src, raw_eps)
        else:
            padded = pl.pallas_call(
                partial(fa_layer_out_kernel, compute_dtype=compute_dtype),
                out_shape=jax.ShapeDtypeStruct((N, out_p), jnp.float32),
                grid_spec=pltpu.PrefetchScalarGridSpec(
                    num_scalar_prefetch=0, grid=grid,
                    in_specs=layer_specs() + [
                        pl.BlockSpec((D, out_p), lambda i, k: (0, 0)),  # t2 weight (padded)
                        pl.BlockSpec((1, out_p), lambda i, k: (0, 0)),  # t2 bias (padded)
                    ],
                    out_specs=pl.BlockSpec((tile_n, out_p), lambda i, k: (i, 0)),
                    scratch_shapes=[pltpu.VMEM((tile_n, D), jnp.float32)]),
                compiler_params=cparams, cost_estimate=cost,
            )(a_col, b_row, adj_c, d_col, d_row, h_src, raw_eps, w2_p, b2_p)
            out = padded[:, :out_dim]
    return out


# ----------------------------------------------------------------------------
# Params & pure-JAX reference
# ----------------------------------------------------------------------------
def init_params(key, hidden_dim, out_dim, layer_num):
    ks = jax.random.split(key, 2 * layer_num + 2)
    gain = 1.414
    gw, gb = [], []
    for l in range(layer_num):
        std = gain * (2.0 / (2 * hidden_dim + 1)) ** 0.5     # xavier_normal_ (1, 2*hidden)
        gw.append(jax.random.normal(ks[2 * l], (2, hidden_dim), jnp.float32) * std)
        s = 1.0 / (2 * hidden_dim) ** 0.5
        gb.append(jax.random.uniform(ks[2 * l + 1], (1, 1), jnp.float32, -s, s))
    std2 = gain * (2.0 / (hidden_dim + out_dim)) ** 0.5
    w2 = jax.random.normal(ks[-2], (hidden_dim, out_dim), jnp.float32) * std2
    s2 = 1.0 / hidden_dim ** 0.5
    b2 = jax.random.uniform(ks[-1], (1, out_dim), jnp.float32, -s2, s2)
    return dict(gate_w=jnp.stack(gw), gate_b=jnp.stack(gb), w2=w2, b2=b2)


def reference_forward(h_in, adj, params, *, eps, layer_num):
    """Pure-JAX mirror of FAGCN.forward (eval mode, dense adjacency)."""
    hp = jax.lax.Precision.HIGHEST
    deg = jnp.maximum(jnp.sum(adj, axis=1), 1.0)
    d = deg ** -0.5
    h = jnp.maximum(h_in, 0.0)
    raw = h
    for l in range(layer_num):
        wg = params['gate_w'][l]
        bg = params['gate_b'][l][0, 0]
        a = jnp.dot(h, wg[0], precision=hp)                    # (N,) dst part of gate
        b = jnp.dot(h, wg[1], precision=hp)                    # (N,) src part of gate
        g = jnp.tanh(a[:, None] + b[None, :] + bg)             # (N, N)
        e = g * d[:, None] * d[None, :] * adj
        z = jnp.dot(e, h, precision=hp)
        h = eps * raw + z
    return jnp.dot(h, params['w2'], precision=hp) + params['b2']


# ----------------------------------------------------------------------------
# Demo / self-test
# ----------------------------------------------------------------------------
if __name__ == "__main__":
    N, HIDDEN, OUT = 256, 128, 16          # nodes, hidden_dim, out_dim
    LAYER_NUM, EPS = 2, 0.3
    TILE_N, TILE_K = 128, 128              # grid = (2, 2): parallel dst x arbitrary src

    key = jax.random.PRNGKey(0)
    kh, ka, kp = jax.random.split(key, 3)
    h_in = jax.random.normal(kh, (N, HIDDEN), jnp.float32)
    adj = (jax.random.uniform(ka, (N, N)) < 0.05).astype(jnp.float32)
    params = init_params(kp, HIDDEN, OUT, LAYER_NUM)

    ref = reference_forward(h_in, adj, params, eps=EPS, layer_num=LAYER_NUM)

    # f32 path: tight tolerance (exact-math validation).
    fwd_f32 = jax.jit(partial(fagcn_forward, eps=EPS, layer_num=LAYER_NUM,
                              tile_n=TILE_N, tile_k=TILE_K,
                              compute_dtype=jnp.float32))
    out_f32 = jax.block_until_ready(fwd_f32(h_in, adj, params))
    assert out_f32.shape == (N, OUT)
    err_f32 = float(jnp.max(jnp.abs(out_f32 - ref)))
    assert jnp.allclose(out_f32, ref, atol=2e-3, rtol=2e-3), err_f32

    # bf16 MXU path (performance default): looser tolerance for bf16 rounding.
    fwd_bf16 = jax.jit(partial(fagcn_forward, eps=EPS, layer_num=LAYER_NUM,
                               tile_n=TILE_N, tile_k=TILE_K,
                               compute_dtype=jnp.bfloat16))
    out_bf16 = jax.block_until_ready(fwd_bf16(h_in, adj, params))
    assert out_bf16.shape == (N, OUT)
    err_bf16 = float(jnp.max(jnp.abs(out_bf16 - ref)))
    assert jnp.allclose(out_bf16, ref, atol=5e-2, rtol=5e-2), err_bf16

    print("KERNEL_OK")
</pallas_src>

<mosaic_0001>
module attributes {stable_mosaic.version = 11 : i64} {
  func.func @fa_layer_kernel(%arg0: i32, %arg1: i32, %arg2: memref<128x1xf32, #tpu.memory_space<vmem>>, %arg3: memref<1x128xf32, #tpu.memory_space<vmem>>, %arg4: memref<128x128xbf16, #tpu.memory_space<vmem>>, %arg5: memref<128x1xf32, #tpu.memory_space<vmem>>, %arg6: memref<1x128xf32, #tpu.memory_space<vmem>>, %arg7: memref<128x128xf32, #tpu.memory_space<vmem>>, %arg8: memref<128x128xf32, #tpu.memory_space<vmem>>, %arg9: memref<128x128xf32, #tpu.memory_space<vmem>>, %arg10: memref<128x128xf32, #tpu.memory_space<vmem>>) attributes {dimension_semantics = [#tpu.dimension_semantics<parallel>, #tpu.dimension_semantics<arbitrary>], iteration_bounds = array<i64: 2, 2>, scalar_prefetch = 0 : i64, scratch_operands = 1 : i64, tpu.core_type = #tpu.core_type<tc>, window_params = [{transform_indices = @transform_0, window_bounds = array<i64: 128, 1>}, {transform_indices = @transform_1, window_bounds = array<i64: 1, 128>}, {transform_indices = @transform_2, window_bounds = array<i64: 128, 128>}, {transform_indices = @transform_3, window_bounds = array<i64: 128, 1>}, {transform_indices = @transform_4, window_bounds = array<i64: 1, 128>}, {transform_indices = @transform_5, window_bounds = array<i64: 128, 128>}, {transform_indices = @transform_6, window_bounds = array<i64: 128, 128>}, {transform_indices = @transform_7, window_bounds = array<i64: 128, 128>}]} {
    %c0_i32 = arith.constant 0 : i32
    %0 = arith.cmpi eq, %arg1, %c0_i32 : i32
    %1 = arith.extui %0 : i1 to i32
    %c0_i32_0 = arith.constant 0 : i32
    %2 = arith.cmpi ne, %1, %c0_i32_0 : i32
    scf.if %2 {
      %cst_15 = arith.constant 0.000000e+00 : f32
      %23 = vector.broadcast %cst_15 : f32 to vector<128x128xf32>
      %c0_16 = arith.constant 0 : index
      %c0_17 = arith.constant 0 : index
      %24 = vector.load %arg10[%c0_16, %c0_17] : memref<128x128xf32, #tpu.memory_space<vmem>>, vector<128x128xf32>
      tpu.vector_store %arg10[%c0_16, %c0_17], %23 {strides = array<i32>} : memref<128x128xf32, #tpu.memory_space<vmem>>, vector<128x128xf32>,
    } else {
    }
    %c0 = arith.constant 0 : index
    %c0_1 = arith.constant 0 : index
    %3 = vector.load %arg2[%c0, %c0_1] : memref<128x1xf32, #tpu.memory_space<vmem>>, vector<128x1xf32>
    %c0_2 = arith.constant 0 : index
    %c0_3 = arith.constant 0 : index
    %4 = vector.load %arg3[%c0_2, %c0_3] : memref<1x128xf32, #tpu.memory_space<vmem>>, vector<1x128xf32>
    %5 = vector.broadcast %3 : vector<128x1xf32> to vector<128x128xf32>
    %6 = vector.broadcast %4 : vector<1x128xf32> to vector<128x128xf32>
    %7 = arith.addf %5, %6 : vector<128x128xf32>
    %8 = math.tanh %7 : vector<128x128xf32>
    %c0_4 = arith.constant 0 : index
    %c0_5 = arith.constant 0 : index
    %9 = vector.load %arg6[%c0_4, %c0_5] : memref<1x128xf32, #tpu.memory_space<vmem>>, vector<1x128xf32>
    %10 = vector.broadcast %9 : vector<1x128xf32> to vector<128x128xf32>
    %11 = arith.mulf %8, %10 : vector<128x128xf32>
    %c0_6 = arith.constant 0 : index
    %c0_7 = arith.constant 0 : index
    %12 = vector.load %arg4[%c0_6, %c0_7] : memref<128x128xbf16, #tpu.memory_space<vmem>>, vector<128x128xbf16>
    %13 = arith.extf %12 : vector<128x128xbf16> to vector<128x128xf32>
    %14 = arith.mulf %11, %13 : vector<128x128xf32>
    %c0_8 = arith.constant 0 : index
    %c0_9 = arith.constant 0 : index
    %15 = vector.load %arg10[%c0_8, %c0_9] : memref<128x128xf32, #tpu.memory_space<vmem>>, vector<128x128xf32>
    %c0_10 = arith.constant 0 : index
    %c0_11 = arith.constant 0 : index
    %16 = vector.load %arg7[%c0_10, %c0_11] : memref<128x128xf32, #tpu.memory_space<vmem>>, vector<128x128xf32>
    %cst = arith.constant dense<0.000000e+00> : vector<128x128xf32>
    %17 = tpu.matmul %14, %16, %cst {dimension_numbers = #tpu.dot_dimension_numbers<[1], [0], [0], [1], [0, 0, 1, 1], [], []>} : vector<128x128xf32>, vector<128x128xf32>, vector<128x128xf32> -> vector<128x128xf32>
    %18 = arith.addf %15, %17 : vector<128x128xf32>
    %c0_12 = arith.constant 0 : index
    %c0_13 = arith.constant 0 : index
    %19 = vector.load %arg10[%c0_12, %c0_13] : memref<128x128xf32, #tpu.memory_space<vmem>>, vector<128x128xf32>
    tpu.vector_store %arg10[%c0_12, %c0_13], %18 {strides = array<i32>} : memref<128x128xf32, #tpu.memory_space<vmem>>, vector<128x128xf32>,
    %c1_i32 = arith.constant 1 : i32
    %20 = arith.cmpi eq, %arg1, %c1_i32 : i32
    %21 = arith.extui %20 : i1 to i32
    %c0_i32_14 = arith.constant 0 : i32
    %22 = arith.cmpi ne, %21, %c0_i32_14 : i32
    scf.if %22 {
      %c0_15 = arith.constant 0 : index
      %c0_16 = arith.constant 0 : index
      %23 = vector.load %arg8[%c0_15, %c0_16] : memref<128x128xf32, #tpu.memory_space<vmem>>, vector<128x128xf32>
      %c0_17 = arith.constant 0 : index
      %c0_18 = arith.constant 0 : index
      %24 = vector.load %arg10[%c0_17, %c0_18] : memref<128x128xf32, #tpu.memory_space<vmem>>, vector<128x128xf32>
      %c0_19 = arith.constant 0 : index
      %c0_20 = arith.constant 0 : index
      %25 = vector.load %arg5[%c0_19, %c0_20] : memref<128x1xf32, #tpu.memory_space<vmem>>, vector<128x1xf32>
      %26 = vector.broadcast %25 : vector<128x1xf32> to vector<128x128xf32>
      %27 = arith.mulf %24, %26 : vector<128x128xf32>
      %28 = arith.addf %23, %27 : vector<128x128xf32>
      %c0_21 = arith.constant 0 : index
      %c0_22 = arith.constant 0 : index
      %29 = vector.load %arg9[%c0_21, %c0_22] : memref<128x128xf32, #tpu.memory_space<vmem>>, vector<128x128xf32>
      tpu.vector_store %arg9[%c0_21, %c0_22], %28 {strides = array<i32>} : memref<128x128xf32, #tpu.memory_space<vmem>>, vector<128x128xf32>,
    } else {
    }
    return
  }
  func.func @transform_0(%arg0: i32, %arg1: i32) -> (i32, i32) {
    %c0_i32 = arith.constant 0 : i32
    %c0_i32_0 = arith.constant 0 : i32
    return %arg0, %c0_i32 : i32, i32
  }
  func.func @transform_1(%arg0: i32, %arg1: i32) -> (i32, i32) {
    %c0_i32 = arith.constant 0 : i32
    %c0_i32_0 = arith.constant 0 : i32
    return %c0_i32, %arg1 : i32, i32
  }
  func.func @transform_2(%arg0: i32, %arg1: i32) -> (i32, i32) {
    %c0_i32 = arith.constant 0 : i32
    return %arg0, %arg1 : i32, i32
  }
  func.func @transform_3(%arg0: i32, %arg1: i32) -> (i32, i32) {
    %c0_i32 = arith.constant 0 : i32
    %c0_i32_0 = arith.constant 0 : i32
    return %arg0, %c0_i32 : i32, i32
  }
  func.func @transform_4(%arg0: i32, %arg1: i32) -> (i32, i32) {
    %c0_i32 = arith.constant 0 : i32
    %c0_i32_0 = arith.constant 0 : i32
    return %c0_i32, %arg1 : i32, i32
  }
  func.func @transform_5(%arg0: i32, %arg1: i32) -> (i32, i32) {
    %c0_i32 = arith.constant 0 : i32
    %c0_i32_0 = arith.constant 0 : i32
    return %arg1, %c0_i32 : i32, i32
  }
  func.func @transform_6(%arg0: i32, %arg1: i32) -> (i32, i32) {
    %c0_i32 = arith.constant 0 : i32
    %c0_i32_0 = arith.constant 0 : i32
    return %arg0, %c0_i32 : i32, i32
  }
  func.func @transform_7(%arg0: i32, %arg1: i32) -> (i32, i32) {
    %c0_i32 = arith.constant 0 : i32
    %c0_i32_0 = arith.constant 0 : i32
    return %arg0, %c0_i32 : i32, i32
  }
}

module attributes {stable_mosaic.version = 11 : i64} {
  func.func @fa_layer_out_kernel(%arg0: i32, %arg1: i32, %arg2: memref<128x1xf32, #tpu.memory_space<vmem>>, %arg3: memref<1x128xf32, #tpu.memory_space<vmem>>, %arg4: memref<128x128xbf16, #tpu.memory_space<vmem>>, %arg5: memref<128x1xf32, #tpu.memory_space<vmem>>, %arg6: memref<1x128xf32, #tpu.memory_space<vmem>>, %arg7: memref<128x128xf32, #tpu.memory_space<vmem>>, %arg8: memref<128x128xf32, #tpu.memory_space<vmem>>, %arg9: memref<128x128xf32, #tpu.memory_space<vmem>>, %arg10: memref<1x128xf32, #tpu.memory_space<vmem>>, %arg11: memref<128x128xf32, #tpu.memory_space<vmem>>, %arg12: memref<128x128xf32, #tpu.memory_space<vmem>>) attributes {dimension_semantics = [#tpu.dimension_semantics<parallel>, #tpu.dimension_semantics<arbitrary>], iteration_bounds = array<i64: 2, 2>, scalar_prefetch = 0 : i64, scratch_operands = 1 : i64, tpu.core_type = #tpu.core_type<tc>, window_params = [{transform_indices = @transform_0, window_bounds = array<i64: 128, 1>}, {transform_indices = @transform_1, window_bounds = array<i64: 1, 128>}, {transform_indices = @transform_2, window_bounds = array<i64: 128, 128>}, {transform_indices = @transform_3, window_bounds = array<i64: 128, 1>}, {transform_indices = @transform_4, window_bounds = array<i64: 1, 128>}, {transform_indices = @transform_5, window_bounds = array<i64: 128, 128>}, {transform_indices = @transform_6, window_bounds = array<i64: 128, 128>}, {pipeline_mode = #tpu.pipeline_mode<synchronous>, transform_indices = @transform_7, window_bounds = array<i64: 128, 128>}, {pipeline_mode = #tpu.pipeline_mode<synchronous>, transform_indices = @transform_8, window_bounds = array<i64: 1, 128>}, {transform_indices = @transform_9, window_bounds = array<i64: 128, 128>}]} {
    %c0_i32 = arith.constant 0 : i32
    %0 = arith.cmpi eq, %arg1, %c0_i32 : i32
    %1 = arith.extui %0 : i1 to i32
    %c0_i32_0 = arith.constant 0 : i32
    %2 = arith.cmpi ne, %1, %c0_i32_0 : i32
    scf.if %2 {
      %cst_15 = arith.constant 0.000000e+00 : f32
      %23 = vector.broadcast %cst_15 : f32 to vector<128x128xf32>
      %c0_16 = arith.constant 0 : index
      %c0_17 = arith.constant 0 : index
      %24 = vector.load %arg12[%c0_16, %c0_17] : memref<128x128xf32, #tpu.memory_space<vmem>>, vector<128x128xf32>
      tpu.vector_store %arg12[%c0_16, %c0_17], %23 {strides = array<i32>} : memref<128x128xf32, #tpu.memory_space<vmem>>, vector<128x128xf32>,
    } else {
    }
    %c0 = arith.constant 0 : index
    %c0_1 = arith.constant 0 : index
    %3 = vector.load %arg2[%c0, %c0_1] : memref<128x1xf32, #tpu.memory_space<vmem>>, vector<128x1xf32>
    %c0_2 = arith.constant 0 : index
    %c0_3 = arith.constant 0 : index
    %4 = vector.load %arg3[%c0_2, %c0_3] : memref<1x128xf32, #tpu.memory_space<vmem>>, vector<1x128xf32>
    %5 = vector.broadcast %3 : vector<128x1xf32> to vector<128x128xf32>
    %6 = vector.broadcast %4 : vector<1x128xf32> to vector<128x128xf32>
    %7 = arith.addf %5, %6 : vector<128x128xf32>
    %8 = math.tanh %7 : vector<128x128xf32>
    %c0_4 = arith.constant 0 : index
    %c0_5 = arith.constant 0 : index
    %9 = vector.load %arg6[%c0_4, %c0_5] : memref<1x128xf32, #tpu.memory_space<vmem>>, vector<1x128xf32>
    %10 = vector.broadcast %9 : vector<1x128xf32> to vector<128x128xf32>
    %11 = arith.mulf %8, %10 : vector<128x128xf32>
    %c0_6 = arith.constant 0 : index
    %c0_7 = arith.constant 0 : index
    %12 = vector.load %arg4[%c0_6, %c0_7] : memref<128x128xbf16, #tpu.memory_space<vmem>>, vector<128x128xbf16>
    %13 = arith.extf %12 : vector<128x128xbf16> to vector<128x128xf32>
    %14 = arith.mulf %11, %13 : vector<128x128xf32>
    %c0_8 = arith.constant 0 : index
    %c0_9 = arith.constant 0 : index
    %15 = vector.load %arg12[%c0_8, %c0_9] : memref<128x128xf32, #tpu.memory_space<vmem>>, vector<128x128xf32>
    %c0_10 = arith.constant 0 : index
    %c0_11 = arith.constant 0 : index
    %16 = vector.load %arg7[%c0_10, %c0_11] : memref<128x128xf32, #tpu.memory_space<vmem>>, vector<128x128xf32>
    %cst = arith.constant dense<0.000000e+00> : vector<128x128xf32>
    %17 = tpu.matmul %14, %16, %cst {dimension_numbers = #tpu.dot_dimension_numbers<[1], [0], [0], [1], [0, 0, 1, 1], [], []>} : vector<128x128xf32>, vector<128x128xf32>, vector<128x128xf32> -> vector<128x128xf32>
    %18 = arith.addf %15, %17 : vector<128x128xf32>
    %c0_12 = arith.constant 0 : index
    %c0_13 = arith.constant 0 : index
    %19 = vector.load %arg12[%c0_12, %c0_13] : memref<128x128xf32, #tpu.memory_space<vmem>>, vector<128x128xf32>
    tpu.vector_store %arg12[%c0_12, %c0_13], %18 {strides = array<i32>} : memref<128x128xf32, #tpu.memory_space<vmem>>, vector<128x128xf32>,
    %c1_i32 = arith.constant 1 : i32
    %20 = arith.cmpi eq, %arg1, %c1_i32 : i32
    %21 = arith.extui %20 : i1 to i32
    %c0_i32_14 = arith.constant 0 : i32
    %22 = arith.cmpi ne, %21, %c0_i32_14 : i32
    scf.if %22 {
      %c0_15 = arith.constant 0 : index
      %c0_16 = arith.constant 0 : index
      %23 = vector.load %arg8[%c0_15, %c0_16] : memref<128x128xf32, #tpu.memory_space<vmem>>, vector<128x128xf32>
      %c0_17 = arith.constant 0 : index
      %c0_18 = arith.constant 0 : index
      %24 = vector.load %arg12[%c0_17, %c0_18] : memref<128x128xf32, #tpu.memory_space<vmem>>, vector<128x128xf32>
      %c0_19 = arith.constant 0 : index
      %c0_20 = arith.constant 0 : index
      %25 = vector.load %arg5[%c0_19, %c0_20] : memref<128x1xf32, #tpu.memory_space<vmem>>, vector<128x1xf32>
      %26 = vector.broadcast %25 : vector<128x1xf32> to vector<128x128xf32>
      %27 = arith.mulf %24, %26 : vector<128x128xf32>
      %28 = arith.addf %23, %27 : vector<128x128xf32>
      %c0_21 = arith.constant 0 : index
      %c0_22 = arith.constant 0 : index
      %29 = vector.load %arg9[%c0_21, %c0_22] : memref<128x128xf32, #tpu.memory_space<vmem>>, vector<128x128xf32>
      %cst_23 = arith.constant dense<0.000000e+00> : vector<128x128xf32>
      %30 = tpu.matmul %28, %29, %cst_23 {dimension_numbers = #tpu.dot_dimension_numbers<[1], [0], [0], [1], [0, 0, 1, 1], [], []>} : vector<128x128xf32>, vector<128x128xf32>, vector<128x128xf32> -> vector<128x128xf32>
      %c0_24 = arith.constant 0 : index
      %c0_25 = arith.constant 0 : index
      %31 = vector.load %arg10[%c0_24, %c0_25] : memref<1x128xf32, #tpu.memory_space<vmem>>, vector<1x128xf32>
      %32 = vector.broadcast %31 : vector<1x128xf32> to vector<128x128xf32>
      %33 = arith.addf %30, %32 : vector<128x128xf32>
      %c0_26 = arith.constant 0 : index
      %c0_27 = arith.constant 0 : index
      %34 = vector.load %arg11[%c0_26, %c0_27] : memref<128x128xf32, #tpu.memory_space<vmem>>, vector<128x128xf32>
      tpu.vector_store %arg11[%c0_26, %c0_27], %33 {strides = array<i32>} : memref<128x128xf32, #tpu.memory_space<vmem>>, vector<128x128xf32>,
    } else {
    }
    return
  }
  func.func @transform_0(%arg0: i32, %arg1: i32) -> (i32, i32) {
    %c0_i32 = arith.constant 0 : i32
    %c0_i32_0 = arith.constant 0 : i32
    return %arg0, %c0_i32 : i32, i32
  }
  func.func @transform_1(%arg0: i32, %arg1: i32) -> (i32, i32) {
    %c0_i32 = arith.constant 0 : i32
    %c0_i32_0 = arith.constant 0 : i32
    return %c0_i32, %arg1 : i32, i32
  }
  func.func @transform_2(%arg0: i32, %arg1: i32) -> (i32, i32) {
    %c0_i32 = arith.constant 0 : i32
    return %arg0, %arg1 : i32, i32
  }
  func.func @transform_3(%arg0: i32, %arg1: i32) -> (i32, i32) {
    %c0_i32 = arith.constant 0 : i32
    %c0_i32_0 = arith.constant 0 : i32
    return %arg0, %c0_i32 : i32, i32
  }
  func.func @transform_4(%arg0: i32, %arg1: i32) -> (i32, i32) {
    %c0_i32 = arith.constant 0 : i32
    %c0_i32_0 = arith.constant 0 : i32
    return %c0_i32, %arg1 : i32, i32
  }
  func.func @transform_5(%arg0: i32, %arg1: i32) -> (i32, i32) {
    %c0_i32 = arith.constant 0 : i32
    %c0_i32_0 = arith.constant 0 : i32
    return %arg1, %c0_i32 : i32, i32
  }
  func.func @transform_6(%arg0: i32, %arg1: i32) -> (i32, i32) {
    %c0_i32 = arith.constant 0 : i32
    %c0_i32_0 = arith.constant 0 : i32
    return %arg0, %c0_i32 : i32, i32
  }
  func.func @transform_7(%arg0: i32, %arg1: i32) -> (i32, i32) {
    %c0_i32 = arith.constant 0 : i32
    %c0_i32_0 = arith.constant 0 : i32
    %c0_i32_1 = arith.constant 0 : i32
    return %c0_i32, %c0_i32_0 : i32, i32
  }
  func.func @transform_8(%arg0: i32, %arg1: i32) -> (i32, i32) {
    %c0_i32 = arith.constant 0 : i32
    %c0_i32_0 = arith.constant 0 : i32
    %c0_i32_1 = arith.constant 0 : i32
    return %c0_i32, %c0_i32_0 : i32, i32
  }
  func.func @transform_9(%arg0: i32, %arg1: i32) -> (i32, i32) {
    %c0_i32 = arith.constant 0 : i32
    %c0_i32_0 = arith.constant 0 : i32
    return %arg0, %c0_i32 : i32, i32
  }
}

</mosaic_0001>

<bundles_post_ra>
// kernel: fagcn_forward.2
= control target key start
LH: loop header
LB: loop body
LE: loop exit
PB: predicated region body
PF: predicated region fallthrough
CT: control target
= control target key end

     0   :  { %s1947_s0 = inlined_call_operand.vmem [shape: f32[256,1], index: 0, kind: input, shape index: {}]   ;;  %s1948_s1 = inlined_call_operand.vmem [shape: f32[1,256], index: 1, kind: input, shape index: {}]   ;;  %s1949_s2 = inlined_call_operand.vmem [shape: bf16[256,256], index: 2, kind: input, shape index: {}]   ;;  %s1950_s3 = inlined_call_operand.vmem [shape: f32[256,1], index: 3, kind: input, shape index: {}]   ;;  %s1951_s4 = inlined_call_operand.vmem [shape: f32[1,256], index: 4, kind: input, shape index: {}]   ;;  %s1952_s5 = inlined_call_operand.vmem [shape: f32[256,128], index: 5, kind: input, shape index: {}]   ;;  %s1953_s6 = inlined_call_operand.vmem [shape: f32[256,128], index: 6, kind: input, shape index: {}]   ;;  %s1954_s7 = inlined_call_operand.vmem [shape: f32[256,128], index: 7, kind: output, shape index: {}]  }
   0x1   :  { %1957 = sst [smem:[#allocation6_spill]] %s1947_s0 }
   0x2   :  { %1958 = sst [smem:[#allocation7_spill]] %s1949_s2 }
   0x3   :  { %s1668_s24 = smov 0   ;;  %s1670_s25 = smov 0  }
   0x4   :  { %s1672_s26 = smov 0   ;;  %s1674_s27 = smov 0  }
   0x5   :  { %s1676_s28 = smov 0   ;;  %s1678_s29 = smov 0  }
   0x6   :  { %s1680_s30 = smov 0  }
   0x7 LB: > { %s26_s8 = sadd.s32 1, %s1615_s28  ;;  %s29_s9 = sadd.s32 1, %s1619_s29  ;;  %s1623_s30 = sphi %s1680_s30, %s17_s30   ;;  %s1619_s29 = sphi %s1678_s29, %s1971_s29   ;;  %s1615_s28 = sphi %s1676_s28, %s1970_s28   ;;  %s1611_s27 = sphi %s1674_s27, %s1969_s27   ;;  %s1607_s26 = sphi %s1672_s26, %s1968_s26   ;;  %s1603_s25 = sphi %s1670_s25, %s1967_s25   ;;  %s1599_s24 = sphi %s1668_s24, %s1966_s24  }
   0x8   : > { %p27_p0 = scmp.ge.s32.totalorder %s26_s8, 2  ;;  %p97_p1 = scmp.ne.s32.totalorder %s1603_s25, %s1599_s24 }
   0x9   : > { %p98_p2 = scmp.eq.s32.totalorder %s1623_s30, 0  ;;  %s90_s13 = sadd.s32 1, %s1603_s25 }
   0xa   : > { %s1973_s8 = smov (%p27_p0, %s26_s8), 0  ;;  %s1975_s9 = smov (!%p27_p0, %s29_s9), %s1619_s29 }
   0xb   : > { %1959 = sst [smem:[#allocation4_spill]] %s1973_s8  ;;  %p99_p3 = por %p98_p2, %p97_p1 }
   0xc   : > { %p31_p4 = scmp.ge.s32.totalorder %s1975_s9, 2  ;;  %s86_s10 = ssub.s32 %s1615_s28, %s1973_s8 }
   0xd   : > { %p1275_p6 = scmp.ge.s32.totalorder %s1623_s30, 4 }
   0xe   : > { %s1977_s9 = smov (%p31_p4, %s1975_s9), 0 }
   0xf   : > { %1960 = sst [smem:[#allocation5_spill]] %s1977_s9  ;;  %s85_s11 = ssub.s32 %s1619_s29, %s1977_s9 }
  0x10   : > { %s87_s12 = sor.u32 %s86_s10, %s85_s11  ;;  %253 = sbr.rel (%p1275_p6) target bundleno = 43 (0x2b), region = 16 }
  0x11   : > { %p88_p5 = scmp.eq.s32.totalorder %s87_s12, 0 }
  0x13   : > { %s1719_s14 = scalar_select %p88_p5, %s1603_s25, %s90_s13  }
  0x17   : > { %271 = sbr.rel (!%p99_p3) target bundleno = 43 (0x2b), region = 28  ;;  %s273_s15 = sand.u32 (%p99_p3), 1, %s1603_s25  }
  0x18   : > { %s1298_s16 = sshll.u32 (%p99_p3), %s1619_s29, 5  ;;  %s1276_s17 = sshll.u32 (%p99_p3), %s273_s15, 6 }
  0x19   : > { %s278_s18 = sadd.s32 (%p99_p3), %s1615_s28, %s1298_s16  ;;  %s1961_s2 = sld [smem:[#allocation7_spill]] (%p99_p3) }
  0x1a   : > { %s1279_s19 = sshll.u32 (%p99_p3), %s278_s18, 2  ;;  %s275_s23 = scalar_lea.vmem (%p99_p3), [#allocation3], %s1276_s17 }
  0x1f   : > { %s1728_s22 = scalar_lea.vmem %s1961_s2, %s1279_s19 }
  0x20   : > { %v296_v0 = vld [vmem:[%s1728_s22] sm:$0xf]  ;;  %v298_v1 = vld [vmem:[%s1728_s22 + $0x8] sm:$0xf]  ;;  %v300_v2 = vld [vmem:[%s1728_s22 + $0x10] sm:$0xf] }
  0x21   : > { %297 = vst [vmem:[%s275_s23] sm:$0xf] %v296_v0  ;;  %299 = vst [vmem:[%s275_s23 + $0x4] sm:$0xf] %v298_v1  ;;  %v302_v3 = vld [vmem:[%s1728_s22 + $0x18] sm:$0xf] }
  0x22   : > { %301 = vst [vmem:[%s275_s23 + $0x8] sm:$0xf] %v300_v2  ;;  %v304_v4 = vld [vmem:[%s1728_s22 + $0x20] sm:$0xf]  ;;  %v306_v5 = vld [vmem:[%s1728_s22 + $0x28] sm:$0xf] }
  0x23   : > { %303 = vst [vmem:[%s275_s23 + $0xc] sm:$0xf] %v302_v3  ;;  %305 = vst [vmem:[%s275_s23 + $0x10] sm:$0xf] %v304_v4  ;;  %v308_v6 = vld [vmem:[%s1728_s22 + $0x30] sm:$0xf] }
  0x24   : > { %307 = vst [vmem:[%s275_s23 + $0x14] sm:$0xf] %v306_v5  ;;  %v310_v7 = vld [vmem:[%s1728_s22 + $0x38] sm:$0xf]  ;;  %v312_v8 = vld [vmem:[%s1728_s22 + $0x40] sm:$0xf] }
  0x25   : > { %309 = vst [vmem:[%s275_s23 + $0x18] sm:$0xf] %v308_v6  ;;  %311 = vst [vmem:[%s275_s23 + $0x1c] sm:$0xf] %v310_v7  ;;  %v314_v9 = vld [vmem:[%s1728_s22 + $0x48] sm:$0xf] }
  0x26   : > { %313 = vst [vmem:[%s275_s23 + $0x20] sm:$0xf] %v312_v8  ;;  %v316_v10 = vld [vmem:[%s1728_s22 + $0x50] sm:$0xf]  ;;  %v318_v11 = vld [vmem:[%s1728_s22 + $0x58] sm:$0xf] }
  0x27   : > { %315 = vst [vmem:[%s275_s23 + $0x24] sm:$0xf] %v314_v9  ;;  %317 = vst [vmem:[%s275_s23 + $0x28] sm:$0xf] %v316_v10  ;;  %v320_v12 = vld [vmem:[%s1728_s22 + $0x60] sm:$0xf] }
  0x28   : > { %319 = vst [vmem:[%s275_s23 + $0x2c] sm:$0xf] %v318_v11  ;;  %v322_v13 = vld [vmem:[%s1728_s22 + $0x68] sm:$0xf]  ;;  %v324_v14 = vld [vmem:[%s1728_s22 + $0x70] sm:$0xf] }
  0x29   : > { %321 = vst [vmem:[%s275_s23 + $0x30] sm:$0xf] %v320_v12  ;;  %323 = vst [vmem:[%s275_s23 + $0x34] sm:$0xf] %v322_v13  ;;  %v326_v15 = vld [vmem:[%s1728_s22 + $0x78] sm:$0xf] }
  0x2a   : > { %325 = vst [vmem:[%s275_s23 + $0x38] sm:$0xf] %v324_v14  ;;  %327 = vst [vmem:[%s275_s23 + $0x3c] sm:$0xf] %v326_v15 }
  0x2b PF: > { %p1280_p7 = scmp.ge.s32.totalorder %s1623_s30, 1  ;;  %p414_p8 = scmp.lt.s32.totalorder %s1623_s30, 5 }
  0x2d   : > { %p415_p9 = pnand %p1280_p7, %p414_p8 }
  0x2e   : > { %s421_s10 = sand.u32 (!%p415_p9), 1, %s1599_s24   ;;  %s1282_s11 = sshll.u32 (!%p415_p9), %s1611_s27, 4 }
  0x2f   : > { %418 = sbr.rel (%p415_p9) target bundleno = 562 (0x232), region = 85  ;;  %s1281_s12 = sshll.u32 (!%p415_p9), %s421_s10, 6 }
  0x30   : > { %p479_p10 = scmp.lt.s32.totalorder (!%p415_p9), %s1282_s11, 31  ;;  %p484_p11 = scmp.lt.s32.totalorder (!%p415_p9), %s1607_s26, 1 }
  0x31   : > { %s1286_s16 = sshll.u32 (!%p415_p9), %s1607_s26, 4  ;;  %s1962_s0 = sld [smem:[#allocation6_spill]] (!%p415_p9) }
  0x32   : > { %p498_p12 = scmp.lt.s32.totalorder (!%p415_p9), %s1286_s16, 31  ;;  %s1788_s2 = scalar_lea.vmem (!%p415_p9), [#allocation3], %s1281_s12 }
  0x33   : > { %p1292_p13 = scmp.ne.s32.totalorder (!%p415_p9), %s1607_s26, 0 }
  0x36   : > { %s1979_s11 = smov (!%p479_p10, %s1282_s11), 31  ;;  %s1981_s16 = smov (!%p498_p12, %s1286_s16), 31 }
  0x37   : > { %s1752_s13 = scalar_select %p484_p11, %s1607_s26, 1 }
  0x38   : > { %s1283_s15 = sshll.u32 %s1979_s11, 3  ;;  %s1287_s21 = sshll.u32 %s1981_s16, 3  ;;  %v1625_v16 = vmov (!%p1292_p13), 0.0  }
  0x39   : > { %s1758_s19 = scalar_lea.vmem %s1962_s0, %s1283_s15  ;;  %s1767_s23 = scalar_lea.vmem %s1950_s3, %s1283_s15  ;;  %519 = vst [vmem:[#allocation2] sm:$0xff] (!%p1292_p13), %v1625_v16  ;;  %520 = vst [vmem:[#allocation2 + $0x8] sm:$0xff] (!%p1292_p13), %v1625_v16 }
  0x3a   : > { %s496_s9 = scalar_lea.vmem %s1951_s4, %s1752_s13  ;;  %s1776_s17 = scalar_lea.vmem %s1953_s6, %s1283_s15  ;;  %521 = vst [vmem:[#allocation2 + $0x10] sm:$0xff] (!%p1292_p13), %v1625_v16  ;;  %522 = vst [vmem:[#allocation2 + $0x18] sm:$0xff] (!%p1292_p13), %v1625_v16 }
  0x3b   : > { %s1781_s20 = scalar_lea.vmem %s1954_s7, %s1283_s15  ;;  %s1786_s24 = scalar_lea.vmem %s1952_s5, %s1287_s21  ;;  %523 = vst [vmem:[#allocation2 + $0x20] sm:$0xff] (!%p1292_p13), %v1625_v16  ;;  %524 = vst [vmem:[#allocation2 + $0x28] sm:$0xff] (!%p1292_p13), %v1625_v16 }
  0x3c   : > { %518 = sbr.rel (%p1292_p13) target bundleno = 67 (0x43), region = 93  ;;  %525 = vst [vmem:[#allocation2 + $0x30] sm:$0xff] (!%p1292_p13), %v1625_v16  ;;  %526 = vst [vmem:[#allocation2 + $0x38] sm:$0xff] (!%p1292_p13), %v1625_v16 }
  0x3d   : > { %527 = vst [vmem:[#allocation2 + $0x40] sm:$0xff] (!%p1292_p13), %v1625_v16  ;;  %528 = vst [vmem:[#allocation2 + $0x48] sm:$0xff] (!%p1292_p13), %v1625_v16 }
  0x3e   : > { %529 = vst [vmem:[#allocation2 + $0x50] sm:$0xff] (!%p1292_p13), %v1625_v16  ;;  %530 = vst [vmem:[#allocation2 + $0x58] sm:$0xff] (!%p1292_p13), %v1625_v16 }
  0x3f   : > { %531 = vst [vmem:[#allocation2 + $0x60] sm:$0xff] (!%p1292_p13), %v1625_v16  ;;  %532 = vst [vmem:[#allocation2 + $0x68] sm:$0xff] (!%p1292_p13), %v1625_v16 }
  0x40   : > { %533 = vst [vmem:[#allocation2 + $0x70] sm:$0xff] (!%p1292_p13), %v1625_v16  ;;  %534 = vst [vmem:[#allocation2 + $0x78] sm:$0xff] (!%p1292_p13), %v1625_v16 }
  0x43 PF: > { %v536_v17 = vld [vmem:[%s1758_s19 + $0x8] sm:$0xff]  ;;  %v535_v18 = vld [vmem:[%s1758_s19] sm:$0xff]  ;;  %v1626_v19 = vmov 0   ;;  %v759_v25 = vld [vmem:[%s1786_s24 + $0x10] sm:$0xff]  ;;  %s1963_s12 = scalar_lea.vmem %s1948_s1, %s1752_s13  ;;  %p1295_p0 = scmp.ne.s32.totalorder %s1607_s26, 1 }
  0x44   : > { %1534 = vset.pattern.permute.xlu1 %v1626_v19  ;;  %1533 = vset.pattern.permute.xlu0 %v1626_v19  ;;  %v544_v20 = vld [vmem:[%s1758_s19 + $0x48] sm:$0xff]  ;;  %v543_v21 = vld [vmem:[%s1758_s19 + $0x40] sm:$0xff]  ;;  %v760_v26 = vld [vmem:[%s1786_s24 + $0x18] sm:$0xff] }
  0x45   : > { %559 = vperm.xlu1 %1534, %v536_v17   ;;  %554 = vperm.xlu0 %1533, %v535_v18   ;;  %v757_v22 = vld [vmem:[%s1786_s24] sm:$0xff]  ;;  %v758_v23 = vld [vmem:[%s1786_s24 + $0x8] sm:$0xff]  ;;  %v545_v27 = vld [vmem:[%s1758_s19 + $0x50] sm:$0xff]  ;;  %v1430_v29 = vpack.c.bf16 %v760_v26, %v759_v25 }
  0x46   : > { %v1426_v24 = vpack.c.bf16 %v758_v23, %v757_v22  ;;  %v537_v28 = vld [vmem:[%s1758_s19 + $0x10] sm:$0xff]  ;;  %v761_v30 = vld [vmem:[%s1786_s24 + $0x20] sm:$0xff]  ;;  %v762_v31 = vld [vmem:[%s1786_s24 + $0x28] sm:$0xff] }
  0x47   : > { %v546_v32 = vld [vmem:[%s1758_s19 + $0x58] sm:$0xff]  ;;  %v1434_v34 = vpack.c.bf16 %v762_v31, %v761_v30  ;;  %v763_v35 = vld [vmem:[%s1786_s24 + $0x30] sm:$0xff]  ;;  %v547_v37 = vld [vmem:[%s1758_s19 + $0x60] sm:$0xff] }
  0x48   : > { %1427 = vmatprep.subr.bf16.mxu0 %v1426_v24  ;;  %1458 = vmatprep.subr.bf16.mxu1 %v1426_v24  ;;  %v538_v33 = vld [vmem:[%s1758_s19 + $0x18] sm:$0xff]  ;;  %v539_v38 = vld [vmem:[%s1758_s19 + $0x20] sm:$0xff]  ;;  %v766_v41 = vld [vmem:[%s1786_s24 + $0x48] sm:$0xff] }
  0x49   : > { %599 = vperm.xlu1 %1534, %v544_v20   ;;  %594 = vperm.xlu0 %1533, %v543_v21   ;;  %v764_v36 = vld [vmem:[%s1786_s24 + $0x38] sm:$0xff]  ;;  %v765_v40 = vld [vmem:[%s1786_s24 + $0x40] sm:$0xff]  ;;  %v548_v42 = vld [vmem:[%s1758_s19 + $0x68] sm:$0xff] }
  0x4a   : > { %1429 = vmatpush3.bf16.msra.mxu0 %v1426_v24  ;;  %1466 = vmatpush3.bf16.msra.mxu1 %v1426_v24  ;;  %v1438_v39 = vpack.c.bf16 %v764_v36, %v763_v35  ;;  %v540_v43 = vld [vmem:[%s1758_s19 + $0x28] sm:$0xff]  ;;  %v1442_v44 = vpack.c.bf16 %v766_v41, %v765_v40  ;;  %v767_v45 = vld [vmem:[%s1786_s24 + $0x50] sm:$0xff]  ;;  %v768_v46 = vld [vmem:[%s1786_s24 + $0x58] sm:$0xff] }
  0x4b   : > { %1431 = vmatprep.subr.bf16.mxu0 %v1430_v29  ;;  %1459 = vmatprep.subr.bf16.mxu1 %v1430_v29  ;;  %v549_v47 = vld [vmem:[%s1758_s19 + $0x70] sm:$0xff]  ;;  %v1446_v49 = vpack.c.bf16 %v768_v46, %v767_v45  ;;  %v769_v50 = vld [vmem:[%s1786_s24 + $0x60] sm:$0xff]  ;;  %v770_v51 = vld [vmem:[%s1786_s24 + $0x68] sm:$0xff] }
  0x4c   : > { %v541_v48 = vld [vmem:[%s1758_s19 + $0x30] sm:$0xff]  ;;  %v550_v52 = vld [vmem:[%s1758_s19 + $0x78] sm:$0xff]  ;;  %v1450_v54 = vpack.c.bf16 %v770_v51, %v769_v50  ;;  %v1828_v58 = vld [vmem:[%s1963_s12] ss:$0 sm:$0xff] }
  0x4d   : > { %604 = vperm.xlu1 %1534, %v545_v27   ;;  %564 = vperm.xlu0 %1533, %v537_v28   ;;  %v542_v53 = vld [vmem:[%s1758_s19 + $0x38] sm:$0xff]  ;;  %v771_v55 = vld [vmem:[%s1786_s24 + $0x70] sm:$0xff]  ;;  %v1300_v7 = vld [vmem:[%s1788_s2] sm:$0xff]  }
  0x4e   : > { %1433 = vmatpush3.bf16.msra.mxu0 %v1430_v29  ;;  %1467 = vmatpush3.bf16.msra.mxu1 %v1430_v29  ;;  %v772_v56 = vld [vmem:[%s1786_s24 + $0x78] sm:$0xff]  ;;  %v1842_v8 = vld [vmem:[%s496_s9] ss:$0 sm:$0xff]  ;;  %v1302_v11 = vunpack.c.h.bf16 %v1300_v7  ;;  %v1301_v15 = vunpack.c.l.bf16 %v1300_v7  ;;  %v1335_v29 = vld [vmem:[%s1788_s2 + $0x28] sm:$0xff]  }
  0x4f   : > { %1435 = vmatprep.subr.bf16.mxu0 %v1434_v34  ;;  %1460 = vmatprep.subr.bf16.mxu1 %v1434_v34  ;;  %v1454_v57 = vpack.c.bf16 %v772_v56, %v771_v55  ;;  %v1334_v16 = vld [vmem:[%s1788_s2 + $0x20] sm:$0xff]   ;;  %v1336_v55 = vld [vmem:[%s1788_s2 + $0x30] sm:$0xff]  }
  0x50   : > { %v1318_v23 = vunpack.c.h.bf16 %v1334_v16  ;;  %v1317_v28 = vunpack.c.l.bf16 %v1334_v16 }
  0x51   : > { %609 = vperm.xlu1 %1534, %v546_v32   ;;  %569 = vperm.xlu0 %1533, %v538_v33   ;;  %v1331_v32 = vld [vmem:[%s1788_s2 + $0x8] sm:$0xff]  }
  0x52   : > { %1437 = vmatpush3.bf16.msra.mxu0 %v1434_v34  ;;  %1468 = vmatpush3.bf16.msra.mxu1 %v1434_v34 }
  0x53   : > { %1439 = vmatprep.subr.bf16.mxu0 %v1438_v39  ;;  %1461 = vmatprep.subr.bf16.mxu1 %v1438_v39 }
  0x55   : > { %614 = vperm.xlu1 %1534, %v547_v37   ;;  %574 = vperm.xlu0 %1533, %v539_v38   ;;  %v1321_v37 = vunpack.c.l.bf16 %v1335_v29 }
  0x56   : > { %1441 = vmatpush3.bf16.msra.mxu0 %v1438_v39  ;;  %1469 = vmatpush3.bf16.msra.mxu1 %v1438_v39 }
  0x57   : > { %1443 = vmatprep.subr.bf16.mxu0 %v1442_v44  ;;  %1462 = vmatprep.subr.bf16.mxu1 %v1442_v44 }
  0x59   : > { %619 = vperm.xlu1 %1534, %v548_v42   ;;  %579 = vperm.xlu0 %1533, %v540_v43   ;;  %v1305_v42 = vunpack.c.l.bf16 %v1331_v32 }
  0x5a   : > { %1445 = vmatpush3.bf16.msra.mxu0 %v1442_v44  ;;  %1470 = vmatpush3.bf16.msra.mxu1 %v1442_v44 }
  0x5b   : > { %1447 = vmatprep.subr.bf16.mxu0 %v1446_v49  ;;  %1463 = vmatprep.subr.bf16.mxu1 %v1446_v49 }
  0x5d   : > { %624 = vperm.xlu1 %1534, %v549_v47   ;;  %584 = vperm.xlu0 %1533, %v541_v48  }
  0x5e   : > { %1449 = vmatpush3.bf16.msra.mxu0 %v1446_v49  ;;  %1471 = vmatpush3.bf16.msra.mxu1 %v1446_v49  ;;  %v1322_v49 = vunpack.c.h.bf16 %v1335_v29 }
  0x5f   : > { %1451 = vmatprep.subr.bf16.mxu0 %v1450_v54  ;;  %1464 = vmatprep.subr.bf16.mxu1 %v1450_v54 }
  0x61   : > { %629 = vperm.xlu1 %1534, %v550_v52   ;;  %589 = vperm.xlu0 %1533, %v542_v53  }
  0x62   : > { %1453 = vmatpush3.bf16.msra.mxu0 %v1450_v54  ;;  %1472 = vmatpush3.bf16.msra.mxu1 %v1450_v54  ;;  %v1306_v54 = vunpack.c.h.bf16 %v1331_v32 }
  0x63   : > { %1455 = vmatprep.subr.bf16.mxu0 %v1454_v57  ;;  %1465 = vmatprep.subr.bf16.mxu1 %v1454_v57 }
  0x66   : > { %1457 = vmatpush3.bf16.msra.mxu0 %v1454_v57  ;;  %1473 = vmatpush3.bf16.msra.mxu1 %v1454_v57 }
  0xc4   : > { %v560_v59 = vpop.permute.xlu1 %559  ;;  %v555_v60 = vpop.permute.xlu0 %554 }
  0xc5   : > { %v639_v61 = vadd.f32 %v1828_v58, %v560_v59  ;;  %v638_v62 = vadd.f32 %v1828_v58, %v555_v60  ;;  %v1332_v59 = vld [vmem:[%s1788_s2 + $0x10] sm:$0xff]  }
  0xc7   : > { %1535 = vtanh.f32 %v639_v61 }
  0xc8   : > { %1537 = vtanh.f32 %v638_v62  ;;  %v600_v63 = vpop.permute.xlu1 %599  ;;  %v595_v0 = vpop.permute.xlu0 %594 }
  0xc9   : > { %v647_v1 = vadd.f32 %v1828_v58, %v600_v63  ;;  %v646_v2 = vadd.f32 %v1828_v58, %v595_v0  ;;  %v1325_v0 = vunpack.c.l.bf16 %v1336_v55 }
  0xcb   : > { %1539 = vtanh.f32 %v647_v1 }
  0xcc   : > { %1541 = vtanh.f32 %v646_v2  ;;  %v605_v3 = vpop.permute.xlu1 %604  ;;  %v565_v4 = vpop.permute.xlu0 %564 }
  0xcd   : > { %v648_v5 = vadd.f32 %v1828_v58, %v605_v3  ;;  %v640_v6 = vadd.f32 %v1828_v58, %v565_v4 }
  0xcf   : > { %1543 = vtanh.f32 %v648_v5  ;;  %v1309_v5 = vunpack.c.l.bf16 %v1332_v59 }
  0xd0   : > { %1545 = vtanh.f32 %v640_v6  ;;  %v610_v9 = vpop.permute.xlu1 %609  ;;  %v570_v10 = vpop.permute.xlu0 %569 }
  0xd1   : > { %v1536_v12 = vpop.eup %1535  ;;  %v649_v13 = vadd.f32 %v1828_v58, %v610_v9  ;;  %v641_v14 = vadd.f32 %v1828_v58, %v570_v10 }
  0xd2   : > { %v1538_v17 = vpop.eup %1537  ;;  %v678_v18 = vmul.f32 %v1536_v12, %v1842_v8 }
  0xd3   : > { %1547 = vtanh.f32 %v649_v13  ;;  %v677_v19 = vmul.f32 %v1538_v17, %v1842_v8  ;;  %v1333_v17 = vld [vmem:[%s1788_s2 + $0x18] sm:$0xff]  }
  0xd4   : > { %1549 = vtanh.f32 %v641_v14  ;;  %v615_v20 = vpop.permute.xlu1 %614  ;;  %v575_v21 = vpop.permute.xlu0 %574  ;;  %v726_v22 = vmul.f32 %v1302_v11, %v678_v18  ;;  %v1326_v11 = vunpack.c.h.bf16 %v1336_v55  ;;  %v1310_v14 = vunpack.c.h.bf16 %v1332_v59 }
  0xd5   : > { %v1540_v24 = vpop.eup %1539  ;;  %v650_v25 = vadd.f32 %v1828_v58, %v615_v20  ;;  %v642_v26 = vadd.f32 %v1828_v58, %v575_v21  ;;  %v725_v27 = vmul.f32 %v1301_v15, %v677_v19  ;;  %v1337_v15 = vld [vmem:[%s1788_s2 + $0x38] sm:$0xff]  }
  0xd6   : > { %v1542_v30 = vpop.eup %1541  ;;  %v686_v31 = vmul.f32 %v1540_v24, %v1842_v8  ;;  %v1329_v20 = vunpack.c.l.bf16 %v1337_v15 }
  0xd7   : > { %1551 = vtanh.f32 %v650_v25  ;;  %1402 = vmatprep.mubr.f32.mxu0 %v725_v27  ;;  %v685_v33 = vmul.f32 %v1542_v30, %v1842_v8 }
  0xd8   : > { %1553 = vtanh.f32 %v642_v26  ;;  %1403 = vmatmul.mubr.f32.vlgmr.msra.gmra.mrb[0].mxu0 %v726_v22  ;;  %v620_v34 = vpop.permute.xlu1 %619  ;;  %v580_v35 = vpop.permute.xlu0 %579  ;;  %v734_v36 = vmul.f32 %v1318_v23, %v686_v31  ;;  %v1313_v23 = vunpack.c.l.bf16 %v1333_v17  ;;  %v1314_v31 = vunpack.c.h.bf16 %v1333_v17 }
  0xd9   : > { %v1544_v38 = vpop.eup %1543  ;;  %v651_v39 = vadd.f32 %v1828_v58, %v620_v34  ;;  %v643_v40 = vadd.f32 %v1828_v58, %v580_v35  ;;  %v733_v41 = vmul.f32 %v1317_v28, %v685_v33  ;;  %v1330_v28 = vunpack.c.h.bf16 %v1337_v15 }
  0xda   : > { %v1546_v43 = vpop.eup %1545  ;;  %v687_v44 = vmul.f32 %v1544_v38, %v1842_v8  ;;  %v741_v38 = vld [vmem:[#allocation2] sm:$0xff] }
  0xdb   : > { %1555 = vtanh.f32 %v651_v39  ;;  %1414 = vmatprep.mubr.f32.mxu1 %v733_v41  ;;  %v679_v45 = vmul.f32 %v1546_v43, %v1842_v8  ;;  %v750_v43 = vld [vmem:[#allocation2 + $0x48] sm:$0xff] }
  0xdc   : > { %1557 = vtanh.f32 %v643_v40  ;;  %1415 = vmatmul.mubr.f32.vlgmr.msra.gmra.mrb[0].mxu1 %v734_v36  ;;  %v625_v46 = vpop.permute.xlu1 %624  ;;  %v585_v47 = vpop.permute.xlu0 %584  ;;  %v735_v48 = vmul.f32 %v1321_v37, %v687_v44  ;;  %v742_v37 = vld [vmem:[#allocation2 + $0x8] sm:$0xff]  ;;  %v749_v44 = vld [vmem:[#allocation2 + $0x40] sm:$0xff] }
  0xdd   : > { %v1548_v50 = vpop.eup %1547  ;;  %v652_v51 = vadd.f32 %v1828_v58, %v625_v46  ;;  %v644_v52 = vadd.f32 %v1828_v58, %v585_v47  ;;  %v727_v53 = vmul.f32 %v1305_v42, %v679_v45 }
  0xde   : > { %v1550_v56 = vpop.eup %1549  ;;  %1417 = vmatprep.mubr.f32.mxu1 %v735_v48  ;;  %v688_v57 = vmul.f32 %v1548_v50, %v1842_v8  ;;  %v751_v50 = vld [vmem:[#allocation2 + $0x50] sm:$0xff] }
  0xdf   : > { %1559 = vtanh.f32 %v652_v51  ;;  %1405 = vmatprep.mubr.f32.mxu0 %v727_v53  ;;  %v680_v60 = vmul.f32 %v1550_v56, %v1842_v8 }
  0xe0   : > { %1561 = vtanh.f32 %v644_v52  ;;  %v630_v61 = vpop.permute.xlu1 %629  ;;  %v590_v62 = vpop.permute.xlu0 %589  ;;  %v736_v63 = vmul.f32 %v1322_v49, %v688_v57  ;;  %v744_v49 = vld [vmem:[#allocation2 + $0x18] sm:$0xff]  ;;  %v743_v52 = vld [vmem:[#allocation2 + $0x10] sm:$0xff] }
  0xe1   : > { %v1552_v1 = vpop.eup %1551  ;;  %v653_v2 = vadd.f32 %v1828_v58, %v630_v61  ;;  %v645_v3 = vadd.f32 %v1828_v58, %v590_v62  ;;  %v728_v4 = vmul.f32 %v1306_v54, %v680_v60  ;;  %v754_v61 = vld [vmem:[#allocation2 + $0x68] sm:$0xff] }
  0xe2   : > { %v1554_v6 = vpop.eup %1553  ;;  %1418 = vmatmul.mubr.f32.gmra.mrb[2].mxu1 %v736_v63  ;;  %v689_v7 = vmul.f32 %v1552_v1, %v1842_v8  ;;  %v746_v62 = vld [vmem:[#allocation2 + $0x28] sm:$0xff]  ;;  %v753_v63 = vld [vmem:[#allocation2 + $0x60] sm:$0xff] }
  0xe3   : > { %1563 = vtanh.f32 %v653_v2  ;;  %1406 = vmatmul.mubr.f32.gmra.mrb[2].mxu0 %v728_v4  ;;  %v681_v9 = vmul.f32 %v1554_v6, %v1842_v8  ;;  %v745_v1 = vld [vmem:[#allocation2 + $0x20] sm:$0xff] }
  0xe4   : > { %1565 = vtanh.f32 %v645_v3  ;;  %v737_v10 = vmul.f32 %v1325_v0, %v689_v7 }
  0xe5   : > { %v1556_v12 = vpop.eup %1555  ;;  %v729_v13 = vmul.f32 %v1309_v5, %v681_v9 }
  0xe6   : > { %v1558_v16 = vpop.eup %1557  ;;  %1420 = vmatprep.mubr.f32.mxu1 %v737_v10  ;;  %v690_v58 = vmul.f32 %v1556_v12, %v1842_v8  ;;  %v756_v10 = vld [vmem:[#allocation2 + $0x78] sm:$0xff]  ;;  %v755_v12 = vld [vmem:[#allocation2 + $0x70] sm:$0xff] }
  0xe7   : > { %1408 = vmatprep.mubr.f32.mxu0 %v729_v13  ;;  %v682_v18 = vmul.f32 %v1558_v16, %v1842_v8 }
  0xe8   : > { %v738_v19 = vmul.f32 %v1326_v11, %v690_v58  ;;  %v748_v11 = vld [vmem:[#allocation2 + $0x38] sm:$0xff] }
  0xe9   : > { %v1560_v21 = vpop.eup %1559  ;;  %v730_v22 = vmul.f32 %v1310_v14, %v682_v18  ;;  %v747_v14 = vld [vmem:[#allocation2 + $0x30] sm:$0xff] }
  0xea   : > { %v1562_v24 = vpop.eup %1561  ;;  %1421 = vmatmul.mubr.f32.gmra.mrb[4].mxu1 %v738_v19  ;;  %v691_v25 = vmul.f32 %v1560_v21, %v1842_v8  ;;  %v988_v21 = vld [vmem:[%s1767_s23 + $0x10] sm:$0xff] (!%p1295_p0) }
  0xeb   : > { %1409 = vmatmul.mubr.f32.gmra.mrb[4].mxu0 %v730_v22  ;;  %v683_v26 = vmul.f32 %v1562_v24, %v1842_v8  ;;  %v986_v22 = vld [vmem:[%s1767_s23] sm:$0xff] (!%p1295_p0)  ;;  %v989_v24 = vld [vmem:[%s1767_s23 + $0x18] sm:$0xff] (!%p1295_p0) }
  0xec   : > { %v739_v27 = vmul.f32 %v1329_v20, %v691_v25  ;;  %v987_v25 = vld [vmem:[%s1767_s23 + $0x8] sm:$0xff] (!%p1295_p0) }
  0xed   : > { %v1564_v29 = vpop.eup %1563  ;;  %v731_v30 = vmul.f32 %v1313_v23, %v683_v26  ;;  %v1627_v23 = vmov (!%p1295_p0), 0   ;;  %v991_v26 = vld [vmem:[%s1767_s23 + $0x28] sm:$0xff] (!%p1295_p0) }
  0xee   : > { %v1566_v32 = vpop.eup %1565  ;;  %1423 = vmatprep.mubr.f32.mxu1 %v739_v27  ;;  %v692_v33 = vmul.f32 %v1564_v29, %v1842_v8  ;;  %1568 = vset.pattern.permute.xlu1 (!%p1295_p0), %v1627_v23  ;;  %v990_v27 = vld [vmem:[%s1767_s23 + $0x20] sm:$0xff] (!%p1295_p0)  ;;  %v992_v29 = vld [vmem:[%s1767_s23 + $0x30] sm:$0xff] (!%p1295_p0) }
  0xef   : > { %1411 = vmatprep.mubr.f32.mxu0 %v731_v30  ;;  %v684_v34 = vmul.f32 %v1566_v32, %v1842_v8  ;;  %v752_v8 = vld [vmem:[#allocation2 + $0x58] sm:$0xff]  ;;  %1567 = vset.pattern.permute.xlu0 (!%p1295_p0), %v1627_v23  ;;  %v995_v30 = vld [vmem:[%s1767_s23 + $0x48] sm:$0xff] (!%p1295_p0) }
  0xf0   : > { %v740_v35 = vmul.f32 %v1330_v28, %v692_v33  ;;  %1014 = vperm.xlu1 (!%p1295_p0), %1568, %v988_v21   ;;  %1004 = vperm.xlu0 (!%p1295_p0), %1567, %v986_v22   ;;  %v993_v28 = vld [vmem:[%s1767_s23 + $0x38] sm:$0xff] (!%p1295_p0)  ;;  %v996_v33 = vld [vmem:[%s1767_s23 + $0x50] sm:$0xff] (!%p1295_p0) }
  0xf1   : > { %v732_v36 = vmul.f32 %v1314_v31, %v684_v34  ;;  %v994_v31 = vld [vmem:[%s1767_s23 + $0x40] sm:$0xff] (!%p1295_p0)  ;;  %v997_v32 = vld [vmem:[%s1767_s23 + $0x58] sm:$0xff] (!%p1295_p0)  ;;  %v999_v34 = vld [vmem:[%s1767_s23 + $0x68] sm:$0xff] (!%p1295_p0) }
  0xf2   : > { %1424 = vmatmul.mubr.f32.gmra.mrb[6].mxu1 %v740_v35  ;;  %v998_v35 = vld [vmem:[%s1767_s23 + $0x60] sm:$0xff] (!%p1295_p0) }
  0xf3   : > { %1412 = vmatmul.mubr.f32.gmra.mrb[6].mxu0 %v732_v36  ;;  %v1001_v36 = vld [vmem:[%s1767_s23 + $0x78] sm:$0xff] (!%p1295_p0) }
  0xf4   : > { %1019 = vperm.xlu1 (!%p1295_p0), %1568, %v989_v24   ;;  %1009 = vperm.xlu0 (!%p1295_p0), %1567, %v987_v25  }
  0xf8   : > { %1029 = vperm.xlu1 (!%p1295_p0), %1568, %v991_v26   ;;  %1024 = vperm.xlu0 (!%p1295_p0), %1567, %v990_v27   ;;  %v965_v27 = vld [vmem:[%s1776_s17 + $0x58] sm:$0xff] (!%p1295_p0) }
  0xfc   : > { %1039 = vperm.xlu1 (!%p1295_p0), %1568, %v993_v28   ;;  %1034 = vperm.xlu0 (!%p1295_p0), %1567, %v992_v29   ;;  %v964_v29 = vld [vmem:[%s1776_s17 + $0x50] sm:$0xff] (!%p1295_p0) }
 0x100   : > { %1049 = vperm.xlu1 (!%p1295_p0), %1568, %v995_v30   ;;  %1044 = vperm.xlu0 (!%p1295_p0), %1567, %v994_v31  }
 0x104   : > { %1059 = vperm.xlu1 (!%p1295_p0), %1568, %v997_v32   ;;  %1054 = vperm.xlu0 (!%p1295_p0), %1567, %v996_v33  }
 0x108   : > { %1069 = vperm.xlu1 (!%p1295_p0), %1568, %v999_v34   ;;  %1064 = vperm.xlu0 (!%p1295_p0), %1567, %v998_v35  }
 0x10c   : > { %1079 = vperm.xlu1 (!%p1295_p0), %1568, %v1001_v36  }
 0x1ab   : > { %v1404_v39 = vpop.f32.mrb[0].mxu0 }
 0x1ac   : > { %v919_v40 = vadd.f32 %v1404_v39, %v742_v37  ;;  %v839_v41 = vpop.f32.mrb[1].mxu0  ;;  %v1000_v37 = vld [vmem:[%s1767_s23 + $0x70] sm:$0xff] (!%p1295_p0) }
 0x1ad   : > { %v918_v42 = vadd.f32 %v839_v41, %v741_v38  ;;  %1074 = vperm.xlu0 (!%p1295_p0), %1567, %v1000_v37   ;;  %v956_v41 = vld [vmem:[%s1776_s17 + $0x10] sm:$0xff] (!%p1295_p0)  ;;  %v967_v37 = vld [vmem:[%s1776_s17 + $0x68] sm:$0xff] (!%p1295_p0) }
 0x1ae   : > { %935 = vst [vmem:[#allocation2 + $0x8] sm:$0xff] %v919_v40  ;;  %v1015_v40 = vpop.permute.xlu1 (!%p1295_p0), %1014 }
 0x1af   : > { %934 = vst [vmem:[#allocation2] sm:$0xff] %v918_v42  ;;  %v1416_v45 = vpop.f32.mrb[0].mxu1  ;;  %v1005_v42 = vpop.permute.xlu0 (!%p1295_p0), %1004 }
 0x1b0   : > { %v927_v46 = vadd.f32 %v1416_v45, %v750_v43  ;;  %v879_v47 = vpop.f32.mrb[1].mxu1  ;;  %v954_v43 = vld [vmem:[%s1776_s17] sm:$0xff] (!%p1295_p0) }
 0x1b1   : > { %v926_v48 = vadd.f32 %v879_v47, %v749_v44 }
 0x1b2   : > { %943 = vst [vmem:[#allocation2 + $0x48] sm:$0xff] %v927_v46 }
 0x1b3   : > { %942 = vst [vmem:[#allocation2 + $0x40] sm:$0xff] %v926_v48 }
 0x1b5   : > { %v1419_v51 = vpop.f32.mrb[2].mxu1  ;;  %v971_v47 = vld [vmem:[#allocation2 + $0x8] sm:$0xff] (!%p1295_p0) }
 0x1b6   : > { %v1407_v53 = vpop.f32.mrb[2].mxu0  ;;  %v929_v54 = vadd.f32 %v1419_v51, %v752_v8  ;;  %v889_v55 = vpop.f32.mrb[3].mxu1  ;;  %v970_v39 = vld [vmem:[#allocation2] sm:$0xff] (!%p1295_p0) }
 0x1b7   : > { %v921_v56 = vadd.f32 %v1407_v53, %v744_v49  ;;  %v849_v57 = vpop.f32.mrb[3].mxu0  ;;  %v928_v59 = vadd.f32 %v889_v55, %v751_v50  ;;  %v1082_v45 = vmul.f32 (!%p1295_p0), %v1005_v42, %v970_v39  ;;  %v1020_v49 = vpop.permute.xlu1 (!%p1295_p0), %1019  ;;  %v957_v50 = vld [vmem:[%s1776_s17 + $0x18] sm:$0xff] (!%p1295_p0)  ;;  %v966_v39 = vld [vmem:[%s1776_s17 + $0x60] sm:$0xff] (!%p1295_p0) }
 0x1b8   : > { %945 = vst [vmem:[#allocation2 + $0x58] sm:$0xff] %v929_v54  ;;  %v920_v60 = vadd.f32 %v849_v57, %v743_v52  ;;  %v1010_v51 = vpop.permute.xlu0 (!%p1295_p0), %1009  ;;  %v955_v52 = vld [vmem:[%s1776_s17 + $0x8] sm:$0xff] (!%p1295_p0) }
 0x1b9   : > { %937 = vst [vmem:[#allocation2 + $0x18] sm:$0xff] %v921_v56  ;;  %944 = vst [vmem:[#allocation2 + $0x50] sm:$0xff] %v928_v59  ;;  %v1098_v8 = vadd.f32 (!%p1295_p0), %v1082_v45, %v954_v43  ;;  %v1083_v54 = vmul.f32 (!%p1295_p0), %v1010_v51, %v971_v47  ;;  %v969_v47 = vld [vmem:[%s1776_s17 + $0x78] sm:$0xff] (!%p1295_p0) }
 0x1ba   : > { %936 = vst [vmem:[#allocation2 + $0x10] sm:$0xff] %v920_v60 }
 0x1bb   : > { %1114 = vst [vmem:[%s1781_s20] sm:$0xff] (!%p1295_p0), %v1098_v8  ;;  %v1099_v59 = vadd.f32 (!%p1295_p0), %v1083_v54, %v955_v52  ;;  %v1030_v60 = vpop.permute.xlu1 (!%p1295_p0), %1029  ;;  %v968_v8 = vld [vmem:[%s1776_s17 + $0x70] sm:$0xff] (!%p1295_p0) }
 0x1bd   : > { %v1422_v0 = vpop.f32.mrb[4].mxu1  ;;  %1115 = vst [vmem:[%s1781_s20 + $0x8] sm:$0xff] (!%p1295_p0), %v1099_v59 }
 0x1be   : > { %v1410_v2 = vpop.f32.mrb[4].mxu0  ;;  %v931_v3 = vadd.f32 %v1422_v0, %v754_v61  ;;  %v899_v4 = vpop.f32.mrb[5].mxu1  ;;  %v959_v61 = vld [vmem:[%s1776_s17 + $0x28] sm:$0xff] (!%p1295_p0) }
 0x1bf   : > { %v923_v5 = vadd.f32 %v1410_v2, %v746_v62  ;;  %v859_v6 = vpop.f32.mrb[5].mxu0  ;;  %v930_v7 = vadd.f32 %v899_v4, %v753_v63  ;;  %v1025_v62 = vpop.permute.xlu0 (!%p1295_p0), %1024  ;;  %v958_v63 = vld [vmem:[%s1776_s17 + $0x20] sm:$0xff] (!%p1295_p0)  ;;  %v981_v22 = vld [vmem:[#allocation2 + $0x58] sm:$0xff] (!%p1295_p0) }
 0x1c0   : > { %947 = vst [vmem:[#allocation2 + $0x68] sm:$0xff] %v931_v3  ;;  %v922_v9 = vadd.f32 %v859_v6, %v745_v1  ;;  %v973_v46 = vld [vmem:[#allocation2 + $0x18] sm:$0xff] (!%p1295_p0)  ;;  %v1040_v6 = vpop.permute.xlu1 (!%p1295_p0), %1039  ;;  %v980_v23 = vld [vmem:[#allocation2 + $0x50] sm:$0xff] (!%p1295_p0) }
 0x1c1   : > { %939 = vst [vmem:[#allocation2 + $0x28] sm:$0xff] %v923_v5  ;;  %946 = vst [vmem:[#allocation2 + $0x60] sm:$0xff] %v930_v7  ;;  %v972_v38 = vld [vmem:[#allocation2 + $0x10] sm:$0xff] (!%p1295_p0)  ;;  %v1085_v53 = vmul.f32 (!%p1295_p0), %v1020_v49, %v973_v46  ;;  %v961_v7 = vld [vmem:[%s1776_s17 + $0x38] sm:$0xff] (!%p1295_p0) }
 0x1c2   : > { %938 = vst [vmem:[#allocation2 + $0x20] sm:$0xff] %v922_v9  ;;  %v1084_v44 = vmul.f32 (!%p1295_p0), %v1015_v40, %v972_v38 }
 0x1c3   : > { %v1101_v57 = vadd.f32 (!%p1295_p0), %v1085_v53, %v957_v50  ;;  %v1035_v9 = vpop.permute.xlu0 (!%p1295_p0), %1034 }
 0x1c4   : > { %953 = sbr.rel (%p1295_p0) target bundleno = 562 (0x232), region = 97  ;;  %v1100_v48 = vadd.f32 (!%p1295_p0), %v1084_v44, %v956_v41 }
 0x1c5   : > { %v1425_v13 = vpop.f32.mrb[6].mxu1  ;;  %1117 = vst [vmem:[%s1781_s20 + $0x18] sm:$0xff] (!%p1295_p0), %v1101_v57 }
 0x1c6   : > { %v1413_v15 = vpop.f32.mrb[6].mxu0  ;;  %v933_v16 = vadd.f32 %v1425_v13, %v756_v10  ;;  %v909_v58 = vpop.f32.mrb[7].mxu1  ;;  %1116 = vst [vmem:[%s1781_s20 + $0x10] sm:$0xff] (!%p1295_p0), %v1100_v48  ;;  %v960_v10 = vld [vmem:[%s1776_s17 + $0x30] sm:$0xff] (!%p1295_p0)  ;;  %v979_v13 = vld [vmem:[#allocation2 + $0x48] sm:$0xff] (!%p1295_p0) }
 0x1c7   : > { %v925_v17 = vadd.f32 %v1413_v15, %v748_v11  ;;  %v869_v18 = vpop.f32.mrb[7].mxu0  ;;  %v932_v19 = vadd.f32 %v909_v58, %v755_v12  ;;  %v1050_v58 = vpop.permute.xlu1 (!%p1295_p0), %1049  ;;  %v983_v32 = vld [vmem:[#allocation2 + $0x68] sm:$0xff] (!%p1295_p0) }
 0x1c8   : > { %949 = vst [vmem:[#allocation2 + $0x78] sm:$0xff] %v933_v16  ;;  %v924_v20 = vadd.f32 %v869_v18, %v747_v14  ;;  %v975_v55 = vld [vmem:[#allocation2 + $0x28] sm:$0xff] (!%p1295_p0)  ;;  %v978_v14 = vld [vmem:[#allocation2 + $0x40] sm:$0xff] (!%p1295_p0)  ;;  %v1045_v18 = vpop.permute.xlu0 (!%p1295_p0), %1044 }
 0x1c9   : > { %941 = vst [vmem:[#allocation2 + $0x38] sm:$0xff] %v925_v17  ;;  %948 = vst [vmem:[#allocation2 + $0x70] sm:$0xff] %v932_v19  ;;  %v974_v56 = vld [vmem:[#allocation2 + $0x20] sm:$0xff] (!%p1295_p0)  ;;  %v1087_v0 = vmul.f32 (!%p1295_p0), %v1030_v60, %v975_v55  ;;  %v963_v17 = vld [vmem:[%s1776_s17 + $0x48] sm:$0xff] (!%p1295_p0)  ;;  %v1090_v21 = vmul.f32 (!%p1295_p0), %v1045_v18, %v978_v14 }
 0x1ca   : > { %940 = vst [vmem:[#allocation2 + $0x30] sm:$0xff] %v924_v20  ;;  %v1086_v1 = vmul.f32 (!%p1295_p0), %v1025_v62, %v974_v56  ;;  %v962_v19 = vld [vmem:[%s1776_s17 + $0x40] sm:$0xff] (!%p1295_p0)  ;;  %v1091_v20 = vmul.f32 (!%p1295_p0), %v1050_v58, %v979_v13 }
 0x1cb   : > { %v1103_v4 = vadd.f32 %v1087_v0, %v959_v61  ;;  %v1106_v25 = vadd.f32 %v1090_v21, %v962_v19  ;;  %v1060_v26 = vpop.permute.xlu1 %1059  ;;  %v982_v33 = vld [vmem:[#allocation2 + $0x60] sm:$0xff] }
 0x1cc   : > { %v1102_v5 = vadd.f32 %v1086_v1, %v958_v63  ;;  %v1107_v24 = vadd.f32 %v1091_v20, %v963_v17  ;;  %v1055_v28 = vpop.permute.xlu0 %1054  ;;  %v1093_v30 = vmul.f32 %v1060_v26, %v981_v22 }
 0x1cd   : > { %1119 = vst [vmem:[%s1781_s20 + $0x28] sm:$0xff] %v1103_v4  ;;  %1122 = vst [vmem:[%s1781_s20 + $0x40] sm:$0xff] %v1106_v25  ;;  %v1092_v31 = vmul.f32 %v1055_v28, %v980_v23 }
 0x1ce   : > { %1118 = vst [vmem:[%s1781_s20 + $0x20] sm:$0xff] %v1102_v5  ;;  %1123 = vst [vmem:[%s1781_s20 + $0x48] sm:$0xff] %v1107_v24  ;;  %v1109_v34 = vadd.f32 %v1093_v30, %v965_v27 }
 0x1cf   : > { %v1108_v35 = vadd.f32 %v1092_v31, %v964_v29  ;;  %v1070_v36 = vpop.permute.xlu1 %1069  ;;  %v985_v42 = vld [vmem:[#allocation2 + $0x78] sm:$0xff] }
 0x1d0   : > { %v977_v2 = vld [vmem:[#allocation2 + $0x38] sm:$0xff]  ;;  %v1065_v38 = vpop.permute.xlu0 %1064  ;;  %1125 = vst [vmem:[%s1781_s20 + $0x58] sm:$0xff] %v1109_v34  ;;  %v1095_v40 = vmul.f32 %v1070_v36, %v983_v32  ;;  %v984_v43 = vld [vmem:[#allocation2 + $0x70] sm:$0xff] }
 0x1d1   : > { %v976_v3 = vld [vmem:[#allocation2 + $0x30] sm:$0xff]  ;;  %v1089_v11 = vmul.f32 %v1040_v6, %v977_v2  ;;  %1124 = vst [vmem:[%s1781_s20 + $0x50] sm:$0xff] %v1108_v35  ;;  %v1094_v41 = vmul.f32 %v1065_v38, %v982_v33 }
 0x1d2   : > { %v1088_v12 = vmul.f32 %v1035_v9, %v976_v3  ;;  %v1111_v44 = vadd.f32 %v1095_v40, %v967_v37 }
 0x1d3   : > { %v1105_v15 = vadd.f32 %v1089_v11, %v961_v7  ;;  %v1110_v45 = vadd.f32 %v1094_v41, %v966_v39  ;;  %v1080_v46 = vpop.permute.xlu1 %1079 }
 0x1d4   : > { %v1104_v16 = vadd.f32 %v1088_v12, %v960_v10  ;;  %1127 = vst [vmem:[%s1781_s20 + $0x68] sm:$0xff] %v1111_v44  ;;  %v1097_v49 = vmul.f32 %v1080_v46, %v985_v42 }
 0x1d5   : > { %1121 = vst [vmem:[%s1781_s20 + $0x38] sm:$0xff] %v1105_v15  ;;  %1126 = vst [vmem:[%s1781_s20 + $0x60] sm:$0xff] %v1110_v45 }
 0x1d6   : > { %1120 = vst [vmem:[%s1781_s20 + $0x30] sm:$0xff] %v1104_v16  ;;  %v1113_v51 = vadd.f32 %v1097_v49, %v969_v47 }
 0x1d8   : > { %1129 = vst [vmem:[%s1781_s20 + $0x78] sm:$0xff] %v1113_v51 }
 0x22c   : > { %v1075_v48 = vpop.permute.xlu0 %1074 }
 0x22d   : > { %v1096_v50 = vmul.f32 %v1075_v48, %v984_v43 }
 0x22f   : > { %v1112_v52 = vadd.f32 %v1096_v50, %v968_v8 }
 0x231   : > { %1128 = vst [vmem:[%s1781_s20 + $0x70] sm:$0xff] %v1112_v52 }
 0x232 PF: > { %s17_s30 = sadd.s32 1, %s1623_s30   ;;  %s1964_s9 = sld [smem:[#allocation4_spill]] }
 0x233   : > { %p14_p1 = scmp.ge.s32.totalorder %s17_s30, 6   ;;  %s1965_s13 = sld [smem:[#allocation5_spill]] }
 0x234   : > { %s1966_s24 = smov %s1603_s25  ;;  %s1967_s25 = smov %s1719_s14 }
 0x235   : > { %s1968_s26 = smov %s1615_s28  ;;  %s1969_s27 = smov %s1619_s29 }
 0x236   :  { %16 = sbr.rel (!%p14_p1) target bundleno = 7 (0x7), region = 150 }
 0x238   : > { %s1970_s28 = smov %s1964_s9 }
 0x239   : > { %s1971_s29 = smov %s1965_s13 }

// kernel: fagcn_forward.3
= control target key start
LH: loop header
LB: loop body
LE: loop exit
PB: predicated region body
PF: predicated region fallthrough
CT: control target
= control target key end

     0   :  { %s2367_s0 = inlined_call_operand.vmem [shape: f32[256,1], index: 0, kind: input, shape index: {}]   ;;  %s2368_s1 = inlined_call_operand.vmem [shape: f32[1,256], index: 1, kind: input, shape index: {}]   ;;  %s2369_s2 = inlined_call_operand.vmem [shape: bf16[256,256], index: 2, kind: input, shape index: {}]   ;;  %s2370_s3 = inlined_call_operand.vmem [shape: f32[256,1], index: 3, kind: input, shape index: {}]   ;;  %s2371_s4 = inlined_call_operand.vmem [shape: f32[1,256], index: 4, kind: input, shape index: {}]   ;;  %s2372_s5 = inlined_call_operand.vmem [shape: f32[256,128], index: 5, kind: input, shape index: {}]   ;;  %s2373_s6 = inlined_call_operand.vmem [shape: f32[256,128], index: 6, kind: input, shape index: {}]   ;;  %s2374_s7 = inlined_call_operand.vmem [shape: f32[128,128], index: 7, kind: input, shape index: {}]   ;;  %s2375_s8 = inlined_call_operand.vmem [shape: f32[1,128], index: 8, kind: input, shape index: {}]   ;;  %s2376_s9 = inlined_call_operand.vmem [shape: f32[256,128], index: 9, kind: output, shape index: {}]  }
   0x1   :  { %2381 = sst [smem:[#allocation8_spill]] %s2367_s0 }
   0x2   :  { %2382 = sst [smem:[#allocation9_spill]] %s2369_s2 }
   0x3   :  { %s2037_s30 = smov 0   ;;  %s2039_s10 = smov 0  }
   0x4   :  { %s2041_s11 = smov 0   ;;  %s2043_s12 = smov 0  }
   0x5   :  { %s2045_s13 = smov 0   ;;  %s2047_s14 = smov 0  }
   0x6   :  { %s2049_s15 = smov 0  }
   0x7 LB: > { %2383 = sst [smem:[#allocation4_spill]] %s1974_s13  ;;  %s28_s16 = sadd.s32 1, %s1974_s13  ;;  %s1982_s15 = sphi %s2049_s15, %s19_s15   ;;  %s1978_s14 = sphi %s2047_s14, %s2393_s14   ;;  %s1974_s13 = sphi %s2045_s13, %s2392_s13   ;;  %s1970_s12 = sphi %s2043_s12, %s2391_s12   ;;  %s1966_s11 = sphi %s2041_s11, %s2390_s11   ;;  %s1962_s10 = sphi %s2039_s10, %s2395_s10   ;;  %s1958_s30 = sphi %s2037_s30, %s2394_s30  }
   0x8   : > { %2384 = sst [smem:[#allocation5_spill]] %s1978_s14  ;;  %p29_p0 = scmp.ge.s32.totalorder %s28_s16, 2 }
   0x9   : > { %s31_s17 = sadd.s32 1, %s1978_s14  ;;  %p99_p1 = scmp.ne.s32.totalorder %s1962_s10, %s1958_s30 }
   0xa   : > { %p100_p2 = scmp.eq.s32.totalorder %s1982_s15, 0  ;;  %s2397_s16 = smov (%p29_p0, %s28_s16), 0 }
   0xb   : > { %2385 = sst [smem:[#allocation6_spill]] %s2397_s16  ;;  %s2399_s17 = smov (!%p29_p0, %s31_s17), %s1978_s14 }
   0xc   : > { %p101_p3 = por %p100_p2, %p99_p1  ;;  %p33_p4 = scmp.ge.s32.totalorder %s2399_s17, 2 }
   0xd   : > { %s88_s18 = ssub.s32 %s1974_s13, %s2397_s16  ;;  %s92_s21 = sadd.s32 1, %s1962_s10 }
   0xe   : > { %s2401_s17 = smov (%p33_p4, %s2399_s17), 0  ;;  %p1497_p6 = scmp.ge.s32.totalorder %s1982_s15, 4 }
   0xf   : > { %2386 = sst [smem:[#allocation7_spill]] %s2401_s17  ;;  %s87_s19 = ssub.s32 %s1978_s14, %s2401_s17 }
  0x10   : > { %s89_s20 = sor.u32 %s88_s18, %s87_s19  ;;  %303 = sbr.rel (%p1497_p6) target bundleno = 43 (0x2b), region = 24 }
  0x11   : > { %p90_p5 = scmp.eq.s32.totalorder %s89_s20, 0 }
  0x13   : > { %s2088_s22 = scalar_select %p90_p5, %s1962_s10, %s92_s21  }
  0x17   : > { %321 = sbr.rel (!%p101_p3) target bundleno = 43 (0x2b), region = 36  ;;  %s323_s23 = sand.u32 (%p101_p3), 1, %s1962_s10  }
  0x18   : > { %s1521_s24 = sshll.u32 (%p101_p3), %s1978_s14, 5  ;;  %s1498_s25 = sshll.u32 (%p101_p3), %s323_s23, 6 }
  0x19   : > { %s328_s26 = sadd.s32 (%p101_p3), %s1974_s13, %s1521_s24  ;;  %s2387_s2 = sld [smem:[#allocation9_spill]] (%p101_p3) }
  0x1a   : > { %s1501_s27 = sshll.u32 (%p101_p3), %s328_s26, 2  ;;  %s325_s19 = scalar_lea.vmem (%p101_p3), [#allocation3], %s1498_s25 }
  0x1f   : > { %s2097_s18 = scalar_lea.vmem %s2387_s2, %s1501_s27 }
  0x20   : > { %v346_v0 = vld [vmem:[%s2097_s18] sm:$0xf]  ;;  %v348_v1 = vld [vmem:[%s2097_s18 + $0x8] sm:$0xf]  ;;  %v350_v2 = vld [vmem:[%s2097_s18 + $0x10] sm:$0xf] }
  0x21   : > { %347 = vst [vmem:[%s325_s19] sm:$0xf] %v346_v0  ;;  %349 = vst [vmem:[%s325_s19 + $0x4] sm:$0xf] %v348_v1  ;;  %v352_v3 = vld [vmem:[%s2097_s18 + $0x18] sm:$0xf] }
  0x22   : > { %351 = vst [vmem:[%s325_s19 + $0x8] sm:$0xf] %v350_v2  ;;  %v354_v4 = vld [vmem:[%s2097_s18 + $0x20] sm:$0xf]  ;;  %v356_v5 = vld [vmem:[%s2097_s18 + $0x28] sm:$0xf] }
  0x23   : > { %353 = vst [vmem:[%s325_s19 + $0xc] sm:$0xf] %v352_v3  ;;  %355 = vst [vmem:[%s325_s19 + $0x10] sm:$0xf] %v354_v4  ;;  %v358_v6 = vld [vmem:[%s2097_s18 + $0x30] sm:$0xf] }
  0x24   : > { %357 = vst [vmem:[%s325_s19 + $0x14] sm:$0xf] %v356_v5  ;;  %v360_v7 = vld [vmem:[%s2097_s18 + $0x38] sm:$0xf]  ;;  %v362_v8 = vld [vmem:[%s2097_s18 + $0x40] sm:$0xf] }
  0x25   : > { %359 = vst [vmem:[%s325_s19 + $0x18] sm:$0xf] %v358_v6  ;;  %361 = vst [vmem:[%s325_s19 + $0x1c] sm:$0xf] %v360_v7  ;;  %v364_v9 = vld [vmem:[%s2097_s18 + $0x48] sm:$0xf] }
  0x26   : > { %363 = vst [vmem:[%s325_s19 + $0x20] sm:$0xf] %v362_v8  ;;  %v366_v10 = vld [vmem:[%s2097_s18 + $0x50] sm:$0xf]  ;;  %v368_v11 = vld [vmem:[%s2097_s18 + $0x58] sm:$0xf] }
  0x27   : > { %365 = vst [vmem:[%s325_s19 + $0x24] sm:$0xf] %v364_v9  ;;  %367 = vst [vmem:[%s325_s19 + $0x28] sm:$0xf] %v366_v10  ;;  %v370_v12 = vld [vmem:[%s2097_s18 + $0x60] sm:$0xf] }
  0x28   : > { %369 = vst [vmem:[%s325_s19 + $0x2c] sm:$0xf] %v368_v11  ;;  %v372_v13 = vld [vmem:[%s2097_s18 + $0x68] sm:$0xf]  ;;  %v374_v14 = vld [vmem:[%s2097_s18 + $0x70] sm:$0xf] }
  0x29   : > { %371 = vst [vmem:[%s325_s19 + $0x30] sm:$0xf] %v370_v12  ;;  %373 = vst [vmem:[%s325_s19 + $0x34] sm:$0xf] %v372_v13  ;;  %v376_v15 = vld [vmem:[%s2097_s18 + $0x78] sm:$0xf] }
  0x2a   : > { %375 = vst [vmem:[%s325_s19 + $0x38] sm:$0xf] %v374_v14  ;;  %377 = vst [vmem:[%s325_s19 + $0x3c] sm:$0xf] %v376_v15 }
  0x2b PF: > { %p1502_p7 = scmp.ge.s32.totalorder %s1982_s15, 1  ;;  %p464_p8 = scmp.lt.s32.totalorder %s1982_s15, 5 }
  0x2d   : > { %p465_p9 = pnand %p1502_p7, %p464_p8 }
  0x2e   : > { %s471_s20 = sand.u32 (!%p465_p9), 1, %s1958_s30   ;;  %s1504_s21 = sshll.u32 (!%p465_p9), %s1970_s12, 4 }
  0x2f   : > { %468 = sbr.rel (%p465_p9) target bundleno = 793 (0x319), region = 93  ;;  %s1503_s23 = sshll.u32 (!%p465_p9), %s471_s20, 6 }
  0x30   : > { %p533_p10 = scmp.lt.s32.totalorder (!%p465_p9), %s1504_s21, 31  ;;  %p538_p11 = scmp.lt.s32.totalorder (!%p465_p9), %s1966_s11, 1 }
  0x31   : > { %s1508_s26 = sshll.u32 (!%p465_p9), %s1966_s11, 4  ;;  %s2388_s0 = sld [smem:[#allocation8_spill]] (!%p465_p9) }
  0x32   : > { %p552_p12 = scmp.lt.s32.totalorder (!%p465_p9), %s1508_s26, 31  ;;  %s2157_s16 = scalar_lea.vmem (!%p465_p9), [#allocation3], %s1503_s23 }
  0x33   : > { %p1514_p13 = scmp.ne.s32.totalorder (!%p465_p9), %s1966_s11, 0 }
  0x36   : > { %s2403_s21 = smov (!%p533_p10, %s1504_s21), 31  ;;  %s2405_s26 = smov (!%p552_p12, %s1508_s26), 31 }
  0x37   : > { %s2121_s24 = scalar_select %p538_p11, %s1966_s11, 1 }
  0x38   : > { %s1505_s25 = sshll.u32 %s2403_s21, 3  ;;  %s1509_s19 = sshll.u32 %s2405_s26, 3  ;;  %v1984_v16 = vmov (!%p1514_p13), 0.0  }
  0x39   : > { %s2127_s29 = scalar_lea.vmem %s2388_s0, %s1505_s25  ;;  %s2136_s2 = scalar_lea.vmem %s2370_s3, %s1505_s25  ;;  %573 = vst [vmem:[#allocation2] sm:$0xff] (!%p1514_p13), %v1984_v16  ;;  %574 = vst [vmem:[#allocation2 + $0x8] sm:$0xff] (!%p1514_p13), %v1984_v16 }
  0x3a   : > { %s550_s14 = scalar_lea.vmem %s2371_s4, %s2121_s24  ;;  %s2145_s27 = scalar_lea.vmem %s2373_s6, %s1505_s25  ;;  %575 = vst [vmem:[#allocation2 + $0x10] sm:$0xff] (!%p1514_p13), %v1984_v16  ;;  %576 = vst [vmem:[#allocation2 + $0x18] sm:$0xff] (!%p1514_p13), %v1984_v16 }
  0x3b   : > { %s2150_s18 = scalar_lea.vmem %s2376_s9, %s1505_s25  ;;  %s2155_s30 = scalar_lea.vmem %s2372_s5, %s1509_s19  ;;  %577 = vst [vmem:[#allocation2 + $0x20] sm:$0xff] (!%p1514_p13), %v1984_v16  ;;  %578 = vst [vmem:[#allocation2 + $0x28] sm:$0xff] (!%p1514_p13), %v1984_v16 }
  0x3c   : > { %572 = sbr.rel (%p1514_p13) target bundleno = 67 (0x43), region = 101  ;;  %579 = vst [vmem:[#allocation2 + $0x30] sm:$0xff] (!%p1514_p13), %v1984_v16  ;;  %580 = vst [vmem:[#allocation2 + $0x38] sm:$0xff] (!%p1514_p13), %v1984_v16 }
  0x3d   : > { %581 = vst [vmem:[#allocation2 + $0x40] sm:$0xff] (!%p1514_p13), %v1984_v16  ;;  %582 = vst [vmem:[#allocation2 + $0x48] sm:$0xff] (!%p1514_p13), %v1984_v16 }
  0x3e   : > { %583 = vst [vmem:[#allocation2 + $0x50] sm:$0xff] (!%p1514_p13), %v1984_v16  ;;  %584 = vst [vmem:[#allocation2 + $0x58] sm:$0xff] (!%p1514_p13), %v1984_v16 }
  0x3f   : > { %585 = vst [vmem:[#allocation2 + $0x60] sm:$0xff] (!%p1514_p13), %v1984_v16  ;;  %586 = vst [vmem:[#allocation2 + $0x68] sm:$0xff] (!%p1514_p13), %v1984_v16 }
  0x40   : > { %587 = vst [vmem:[#allocation2 + $0x70] sm:$0xff] (!%p1514_p13), %v1984_v16  ;;  %588 = vst [vmem:[#allocation2 + $0x78] sm:$0xff] (!%p1514_p13), %v1984_v16 }
  0x43 PF: > { %v590_v17 = vld [vmem:[%s2127_s29 + $0x8] sm:$0xff]  ;;  %v589_v18 = vld [vmem:[%s2127_s29] sm:$0xff]  ;;  %v1985_v19 = vmov 0   ;;  %v813_v25 = vld [vmem:[%s2155_s30 + $0x10] sm:$0xff]  ;;  %s2389_s17 = scalar_lea.vmem %s2368_s1, %s2121_s24  ;;  %p1517_p0 = scmp.ne.s32.totalorder %s1966_s11, 1 }
  0x44   : > { %1893 = vset.pattern.permute.xlu1 %v1985_v19  ;;  %1892 = vset.pattern.permute.xlu0 %v1985_v19  ;;  %v598_v20 = vld [vmem:[%s2127_s29 + $0x48] sm:$0xff]  ;;  %v597_v21 = vld [vmem:[%s2127_s29 + $0x40] sm:$0xff]  ;;  %v814_v26 = vld [vmem:[%s2155_s30 + $0x18] sm:$0xff] }
  0x45   : > { %613 = vperm.xlu1 %1893, %v590_v17   ;;  %608 = vperm.xlu0 %1892, %v589_v18   ;;  %v811_v22 = vld [vmem:[%s2155_s30] sm:$0xff]  ;;  %v812_v23 = vld [vmem:[%s2155_s30 + $0x8] sm:$0xff]  ;;  %v599_v27 = vld [vmem:[%s2127_s29 + $0x50] sm:$0xff]  ;;  %v1741_v29 = vpack.c.bf16 %v814_v26, %v813_v25 }
  0x46   : > { %v1737_v24 = vpack.c.bf16 %v812_v23, %v811_v22  ;;  %v591_v28 = vld [vmem:[%s2127_s29 + $0x10] sm:$0xff]  ;;  %v815_v30 = vld [vmem:[%s2155_s30 + $0x20] sm:$0xff]  ;;  %v816_v31 = vld [vmem:[%s2155_s30 + $0x28] sm:$0xff] }
  0x47   : > { %v600_v32 = vld [vmem:[%s2127_s29 + $0x58] sm:$0xff]  ;;  %v1745_v34 = vpack.c.bf16 %v816_v31, %v815_v30  ;;  %v817_v35 = vld [vmem:[%s2155_s30 + $0x30] sm:$0xff]  ;;  %v601_v37 = vld [vmem:[%s2127_s29 + $0x60] sm:$0xff] }
  0x48   : > { %1738 = vmatprep.subr.bf16.mxu0 %v1737_v24  ;;  %1801 = vmatprep.subr.bf16.mxu1 %v1737_v24  ;;  %v592_v33 = vld [vmem:[%s2127_s29 + $0x18] sm:$0xff]  ;;  %v593_v38 = vld [vmem:[%s2127_s29 + $0x20] sm:$0xff]  ;;  %v820_v41 = vld [vmem:[%s2155_s30 + $0x48] sm:$0xff] }
  0x49   : > { %653 = vperm.xlu1 %1893, %v598_v20   ;;  %648 = vperm.xlu0 %1892, %v597_v21   ;;  %v818_v36 = vld [vmem:[%s2155_s30 + $0x38] sm:$0xff]  ;;  %v819_v40 = vld [vmem:[%s2155_s30 + $0x40] sm:$0xff]  ;;  %v602_v42 = vld [vmem:[%s2127_s29 + $0x68] sm:$0xff] }
  0x4a   : > { %1740 = vmatpush3.bf16.msra.mxu0 %v1737_v24  ;;  %1809 = vmatpush3.bf16.msra.mxu1 %v1737_v24  ;;  %v1749_v39 = vpack.c.bf16 %v818_v36, %v817_v35  ;;  %v594_v43 = vld [vmem:[%s2127_s29 + $0x28] sm:$0xff]  ;;  %v1753_v44 = vpack.c.bf16 %v820_v41, %v819_v40  ;;  %v821_v45 = vld [vmem:[%s2155_s30 + $0x50] sm:$0xff]  ;;  %v822_v46 = vld [vmem:[%s2155_s30 + $0x58] sm:$0xff] }
  0x4b   : > { %1742 = vmatprep.subr.bf16.mxu0 %v1741_v29  ;;  %1802 = vmatprep.subr.bf16.mxu1 %v1741_v29  ;;  %v603_v47 = vld [vmem:[%s2127_s29 + $0x70] sm:$0xff]  ;;  %v1757_v49 = vpack.c.bf16 %v822_v46, %v821_v45  ;;  %v823_v50 = vld [vmem:[%s2155_s30 + $0x60] sm:$0xff]  ;;  %v824_v51 = vld [vmem:[%s2155_s30 + $0x68] sm:$0xff] }
  0x4c   : > { %v595_v48 = vld [vmem:[%s2127_s29 + $0x30] sm:$0xff]  ;;  %v604_v52 = vld [vmem:[%s2127_s29 + $0x78] sm:$0xff]  ;;  %v1761_v54 = vpack.c.bf16 %v824_v51, %v823_v50  ;;  %v2197_v58 = vld [vmem:[%s2389_s17] ss:$0 sm:$0xff] }
  0x4d   : > { %658 = vperm.xlu1 %1893, %v599_v27   ;;  %618 = vperm.xlu0 %1892, %v591_v28   ;;  %v596_v53 = vld [vmem:[%s2127_s29 + $0x38] sm:$0xff]  ;;  %v825_v55 = vld [vmem:[%s2155_s30 + $0x70] sm:$0xff]  ;;  %v1523_v7 = vld [vmem:[%s2157_s16] sm:$0xff]  }
  0x4e   : > { %1744 = vmatpush3.bf16.msra.mxu0 %v1741_v29  ;;  %1810 = vmatpush3.bf16.msra.mxu1 %v1741_v29  ;;  %v826_v56 = vld [vmem:[%s2155_s30 + $0x78] sm:$0xff]  ;;  %v2211_v8 = vld [vmem:[%s550_s14] ss:$0 sm:$0xff]  ;;  %v1525_v11 = vunpack.c.h.bf16 %v1523_v7  ;;  %v1524_v15 = vunpack.c.l.bf16 %v1523_v7  ;;  %v1558_v29 = vld [vmem:[%s2157_s16 + $0x28] sm:$0xff]  }
  0x4f   : > { %1746 = vmatprep.subr.bf16.mxu0 %v1745_v34  ;;  %1803 = vmatprep.subr.bf16.mxu1 %v1745_v34  ;;  %v1765_v57 = vpack.c.bf16 %v826_v56, %v825_v55  ;;  %v1557_v16 = vld [vmem:[%s2157_s16 + $0x20] sm:$0xff]   ;;  %v1559_v55 = vld [vmem:[%s2157_s16 + $0x30] sm:$0xff]  }
  0x50   : > { %v1541_v23 = vunpack.c.h.bf16 %v1557_v16  ;;  %v1540_v28 = vunpack.c.l.bf16 %v1557_v16 }
  0x51   : > { %663 = vperm.xlu1 %1893, %v600_v32   ;;  %623 = vperm.xlu0 %1892, %v592_v33   ;;  %v1554_v32 = vld [vmem:[%s2157_s16 + $0x8] sm:$0xff]  }
  0x52   : > { %1748 = vmatpush3.bf16.msra.mxu0 %v1745_v34  ;;  %1811 = vmatpush3.bf16.msra.mxu1 %v1745_v34 }
  0x53   : > { %1750 = vmatprep.subr.bf16.mxu0 %v1749_v39  ;;  %1804 = vmatprep.subr.bf16.mxu1 %v1749_v39 }
  0x55   : > { %668 = vperm.xlu1 %1893, %v601_v37   ;;  %628 = vperm.xlu0 %1892, %v593_v38   ;;  %v1544_v37 = vunpack.c.l.bf16 %v1558_v29 }
  0x56   : > { %1752 = vmatpush3.bf16.msra.mxu0 %v1749_v39  ;;  %1812 = vmatpush3.bf16.msra.mxu1 %v1749_v39 }
  0x57   : > { %1754 = vmatprep.subr.bf16.mxu0 %v1753_v44  ;;  %1805 = vmatprep.subr.bf16.mxu1 %v1753_v44 }
  0x59   : > { %673 = vperm.xlu1 %1893, %v602_v42   ;;  %633 = vperm.xlu0 %1892, %v594_v43   ;;  %v1528_v42 = vunpack.c.l.bf16 %v1554_v32 }
  0x5a   : > { %1756 = vmatpush3.bf16.msra.mxu0 %v1753_v44  ;;  %1813 = vmatpush3.bf16.msra.mxu1 %v1753_v44 }
  0x5b   : > { %1758 = vmatprep.subr.bf16.mxu0 %v1757_v49  ;;  %1806 = vmatprep.subr.bf16.mxu1 %v1757_v49 }
  0x5d   : > { %678 = vperm.xlu1 %1893, %v603_v47   ;;  %638 = vperm.xlu0 %1892, %v595_v48  }
  0x5e   : > { %1760 = vmatpush3.bf16.msra.mxu0 %v1757_v49  ;;  %1814 = vmatpush3.bf16.msra.mxu1 %v1757_v49  ;;  %v1545_v49 = vunpack.c.h.bf16 %v1558_v29 }
  0x5f   : > { %1762 = vmatprep.subr.bf16.mxu0 %v1761_v54  ;;  %1807 = vmatprep.subr.bf16.mxu1 %v1761_v54 }
  0x61   : > { %683 = vperm.xlu1 %1893, %v604_v52   ;;  %643 = vperm.xlu0 %1892, %v596_v53  }
  0x62   : > { %1764 = vmatpush3.bf16.msra.mxu0 %v1761_v54  ;;  %1815 = vmatpush3.bf16.msra.mxu1 %v1761_v54  ;;  %v1529_v54 = vunpack.c.h.bf16 %v1554_v32 }
  0x63   : > { %1766 = vmatprep.subr.bf16.mxu0 %v1765_v57  ;;  %1808 = vmatprep.subr.bf16.mxu1 %v1765_v57 }
  0x66   : > { %1768 = vmatpush3.bf16.msra.mxu0 %v1765_v57  ;;  %1816 = vmatpush3.bf16.msra.mxu1 %v1765_v57 }
  0xc4   : > { %v614_v59 = vpop.permute.xlu1 %613  ;;  %v609_v60 = vpop.permute.xlu0 %608 }
  0xc5   : > { %v693_v61 = vadd.f32 %v2197_v58, %v614_v59  ;;  %v692_v62 = vadd.f32 %v2197_v58, %v609_v60  ;;  %v1555_v59 = vld [vmem:[%s2157_s16 + $0x10] sm:$0xff]  }
  0xc7   : > { %1894 = vtanh.f32 %v693_v61 }
  0xc8   : > { %1896 = vtanh.f32 %v692_v62  ;;  %v654_v63 = vpop.permute.xlu1 %653  ;;  %v649_v0 = vpop.permute.xlu0 %648 }
  0xc9   : > { %v701_v1 = vadd.f32 %v2197_v58, %v654_v63  ;;  %v700_v2 = vadd.f32 %v2197_v58, %v649_v0  ;;  %v1548_v0 = vunpack.c.l.bf16 %v1559_v55 }
  0xcb   : > { %1898 = vtanh.f32 %v701_v1 }
  0xcc   : > { %1900 = vtanh.f32 %v700_v2  ;;  %v659_v3 = vpop.permute.xlu1 %658  ;;  %v619_v4 = vpop.permute.xlu0 %618 }
  0xcd   : > { %v702_v5 = vadd.f32 %v2197_v58, %v659_v3  ;;  %v694_v6 = vadd.f32 %v2197_v58, %v619_v4 }
  0xcf   : > { %1902 = vtanh.f32 %v702_v5  ;;  %v1532_v5 = vunpack.c.l.bf16 %v1555_v59 }
  0xd0   : > { %1904 = vtanh.f32 %v694_v6  ;;  %v664_v9 = vpop.permute.xlu1 %663  ;;  %v624_v10 = vpop.permute.xlu0 %623 }
  0xd1   : > { %v1895_v12 = vpop.eup %1894  ;;  %v703_v13 = vadd.f32 %v2197_v58, %v664_v9  ;;  %v695_v14 = vadd.f32 %v2197_v58, %v624_v10 }
  0xd2   : > { %v1897_v17 = vpop.eup %1896  ;;  %v732_v18 = vmul.f32 %v1895_v12, %v2211_v8 }
  0xd3   : > { %1906 = vtanh.f32 %v703_v13  ;;  %v731_v19 = vmul.f32 %v1897_v17, %v2211_v8  ;;  %v1556_v17 = vld [vmem:[%s2157_s16 + $0x18] sm:$0xff]  }
  0xd4   : > { %1908 = vtanh.f32 %v695_v14  ;;  %v669_v20 = vpop.permute.xlu1 %668  ;;  %v629_v21 = vpop.permute.xlu0 %628  ;;  %v780_v22 = vmul.f32 %v1525_v11, %v732_v18  ;;  %v1549_v11 = vunpack.c.h.bf16 %v1559_v55  ;;  %v1533_v14 = vunpack.c.h.bf16 %v1555_v59 }
  0xd5   : > { %v1899_v24 = vpop.eup %1898  ;;  %v704_v25 = vadd.f32 %v2197_v58, %v669_v20  ;;  %v696_v26 = vadd.f32 %v2197_v58, %v629_v21  ;;  %v779_v27 = vmul.f32 %v1524_v15, %v731_v19  ;;  %v1560_v15 = vld [vmem:[%s2157_s16 + $0x38] sm:$0xff]  }
  0xd6   : > { %v1901_v30 = vpop.eup %1900  ;;  %v740_v31 = vmul.f32 %v1899_v24, %v2211_v8  ;;  %v1552_v20 = vunpack.c.l.bf16 %v1560_v15 }
  0xd7   : > { %1910 = vtanh.f32 %v704_v25  ;;  %1657 = vmatprep.mubr.f32.mxu0 %v779_v27  ;;  %v739_v33 = vmul.f32 %v1901_v30, %v2211_v8 }
  0xd8   : > { %1912 = vtanh.f32 %v696_v26  ;;  %1658 = vmatmul.mubr.f32.vlgmr.msra.gmra.mrb[0].mxu0 %v780_v22  ;;  %v674_v34 = vpop.permute.xlu1 %673  ;;  %v634_v35 = vpop.permute.xlu0 %633  ;;  %v788_v36 = vmul.f32 %v1541_v23, %v740_v31  ;;  %v1536_v23 = vunpack.c.l.bf16 %v1556_v17  ;;  %v1537_v31 = vunpack.c.h.bf16 %v1556_v17 }
  0xd9   : > { %v1903_v38 = vpop.eup %1902  ;;  %v705_v39 = vadd.f32 %v2197_v58, %v674_v34  ;;  %v697_v40 = vadd.f32 %v2197_v58, %v634_v35  ;;  %v787_v41 = vmul.f32 %v1540_v28, %v739_v33  ;;  %v1553_v28 = vunpack.c.h.bf16 %v1560_v15 }
  0xda   : > { %v1905_v43 = vpop.eup %1904  ;;  %v741_v44 = vmul.f32 %v1903_v38, %v2211_v8  ;;  %v795_v38 = vld [vmem:[#allocation2] sm:$0xff] }
  0xdb   : > { %1914 = vtanh.f32 %v705_v39  ;;  %1669 = vmatprep.mubr.f32.mxu1 %v787_v41  ;;  %v733_v45 = vmul.f32 %v1905_v43, %v2211_v8  ;;  %v804_v43 = vld [vmem:[#allocation2 + $0x48] sm:$0xff] }
  0xdc   : > { %1916 = vtanh.f32 %v697_v40  ;;  %1670 = vmatmul.mubr.f32.vlgmr.msra.gmra.mrb[0].mxu1 %v788_v36  ;;  %v679_v46 = vpop.permute.xlu1 %678  ;;  %v639_v47 = vpop.permute.xlu0 %638  ;;  %v789_v48 = vmul.f32 %v1544_v37, %v741_v44  ;;  %v796_v37 = vld [vmem:[#allocation2 + $0x8] sm:$0xff]  ;;  %v803_v44 = vld [vmem:[#allocation2 + $0x40] sm:$0xff] }
  0xdd   : > { %v1907_v50 = vpop.eup %1906  ;;  %v706_v51 = vadd.f32 %v2197_v58, %v679_v46  ;;  %v698_v52 = vadd.f32 %v2197_v58, %v639_v47  ;;  %v781_v53 = vmul.f32 %v1528_v42, %v733_v45 }
  0xde   : > { %v1909_v56 = vpop.eup %1908  ;;  %1672 = vmatprep.mubr.f32.mxu1 %v789_v48  ;;  %v742_v57 = vmul.f32 %v1907_v50, %v2211_v8  ;;  %v805_v50 = vld [vmem:[#allocation2 + $0x50] sm:$0xff] }
  0xdf   : > { %1918 = vtanh.f32 %v706_v51  ;;  %1660 = vmatprep.mubr.f32.mxu0 %v781_v53  ;;  %v734_v60 = vmul.f32 %v1909_v56, %v2211_v8 }
  0xe0   : > { %1920 = vtanh.f32 %v698_v52  ;;  %v684_v61 = vpop.permute.xlu1 %683  ;;  %v644_v62 = vpop.permute.xlu0 %643  ;;  %v790_v63 = vmul.f32 %v1545_v49, %v742_v57  ;;  %v798_v49 = vld [vmem:[#allocation2 + $0x18] sm:$0xff]  ;;  %v797_v52 = vld [vmem:[#allocation2 + $0x10] sm:$0xff] }
  0xe1   : > { %v1911_v1 = vpop.eup %1910  ;;  %v707_v2 = vadd.f32 %v2197_v58, %v684_v61  ;;  %v699_v3 = vadd.f32 %v2197_v58, %v644_v62  ;;  %v782_v4 = vmul.f32 %v1529_v54, %v734_v60  ;;  %v808_v61 = vld [vmem:[#allocation2 + $0x68] sm:$0xff] }
  0xe2   : > { %v1913_v6 = vpop.eup %1912  ;;  %1673 = vmatmul.mubr.f32.gmra.mrb[2].mxu1 %v790_v63  ;;  %v743_v7 = vmul.f32 %v1911_v1, %v2211_v8  ;;  %v800_v62 = vld [vmem:[#allocation2 + $0x28] sm:$0xff]  ;;  %v807_v63 = vld [vmem:[#allocation2 + $0x60] sm:$0xff] }
  0xe3   : > { %1922 = vtanh.f32 %v707_v2  ;;  %1661 = vmatmul.mubr.f32.gmra.mrb[2].mxu0 %v782_v4  ;;  %v735_v9 = vmul.f32 %v1913_v6, %v2211_v8  ;;  %v799_v1 = vld [vmem:[#allocation2 + $0x20] sm:$0xff] }
  0xe4   : > { %1924 = vtanh.f32 %v699_v3  ;;  %v791_v10 = vmul.f32 %v1548_v0, %v743_v7 }
  0xe5   : > { %v1915_v12 = vpop.eup %1914  ;;  %v783_v13 = vmul.f32 %v1532_v5, %v735_v9 }
  0xe6   : > { %v1917_v16 = vpop.eup %1916  ;;  %1675 = vmatprep.mubr.f32.mxu1 %v791_v10  ;;  %v744_v58 = vmul.f32 %v1915_v12, %v2211_v8  ;;  %v810_v10 = vld [vmem:[#allocation2 + $0x78] sm:$0xff]  ;;  %v809_v12 = vld [vmem:[#allocation2 + $0x70] sm:$0xff] }
  0xe7   : > { %1663 = vmatprep.mubr.f32.mxu0 %v783_v13  ;;  %v736_v18 = vmul.f32 %v1917_v16, %v2211_v8 }
  0xe8   : > { %v792_v19 = vmul.f32 %v1549_v11, %v744_v58  ;;  %v802_v11 = vld [vmem:[#allocation2 + $0x38] sm:$0xff] }
  0xe9   : > { %v1919_v21 = vpop.eup %1918  ;;  %v784_v22 = vmul.f32 %v1533_v14, %v736_v18  ;;  %v801_v14 = vld [vmem:[#allocation2 + $0x30] sm:$0xff] }
  0xea   : > { %v1921_v24 = vpop.eup %1920  ;;  %1676 = vmatmul.mubr.f32.gmra.mrb[4].mxu1 %v792_v19  ;;  %v745_v25 = vmul.f32 %v1919_v21, %v2211_v8  ;;  %v1041_v21 = vld [vmem:[%s2136_s2 + $0x8] sm:$0xff] (!%p1517_p0) }
  0xeb   : > { %1664 = vmatmul.mubr.f32.gmra.mrb[4].mxu0 %v784_v22  ;;  %v737_v26 = vmul.f32 %v1921_v24, %v2211_v8  ;;  %v1040_v22 = vld [vmem:[%s2136_s2] sm:$0xff] (!%p1517_p0)  ;;  %v1049_v24 = vld [vmem:[%s2136_s2 + $0x48] sm:$0xff] (!%p1517_p0) }
  0xec   : > { %v793_v27 = vmul.f32 %v1552_v20, %v745_v25  ;;  %v1048_v25 = vld [vmem:[%s2136_s2 + $0x40] sm:$0xff] (!%p1517_p0) }
  0xed   : > { %v1923_v29 = vpop.eup %1922  ;;  %v785_v30 = vmul.f32 %v1536_v23, %v737_v26  ;;  %v1986_v23 = vmov (!%p1517_p0), 0   ;;  %v1168_v26 = vld [vmem:[%s2374_s7] sm:$0xff] (!%p1517_p0) }
  0xee   : > { %v1925_v32 = vpop.eup %1924  ;;  %1678 = vmatprep.mubr.f32.mxu1 %v793_v27  ;;  %v746_v33 = vmul.f32 %v1923_v29, %v2211_v8  ;;  %1927 = vset.pattern.permute.xlu1 (!%p1517_p0), %v1986_v23  ;;  %v1169_v27 = vld [vmem:[%s2374_s7 + $0x8] sm:$0xff] (!%p1517_p0)  ;;  %v1170_v29 = vld [vmem:[%s2374_s7 + $0x10] sm:$0xff] (!%p1517_p0) }
  0xef   : > { %1666 = vmatprep.mubr.f32.mxu0 %v785_v30  ;;  %v738_v34 = vmul.f32 %v1925_v32, %v2211_v8  ;;  %v806_v8 = vld [vmem:[#allocation2 + $0x58] sm:$0xff]  ;;  %1926 = vset.pattern.permute.xlu0 (!%p1517_p0), %v1986_v23  ;;  %v1042_v32 = vld [vmem:[%s2136_s2 + $0x10] sm:$0xff] (!%p1517_p0) }
  0xf0   : > { %v794_v35 = vmul.f32 %v1553_v28, %v746_v33  ;;  %1063 = vperm.xlu1 (!%p1517_p0), %1927, %v1041_v21   ;;  %1058 = vperm.xlu0 (!%p1517_p0), %1926, %v1040_v22   ;;  %v1769_v28 = vpack.c.bf16 (!%p1517_p0), %v1169_v27, %v1168_v26  ;;  %v1171_v30 = vld [vmem:[%s2374_s7 + $0x18] sm:$0xff] (!%p1517_p0)  ;;  %v1018_v21 = vld [vmem:[%s2145_s27 + $0x50] sm:$0xff] (!%p1517_p0) }
  0xf1   : > { %v786_v36 = vmul.f32 %v1537_v31, %v738_v34  ;;  %v1050_v31 = vld [vmem:[%s2136_s2 + $0x50] sm:$0xff] (!%p1517_p0)  ;;  %v1773_v33 = vpack.c.bf16 (!%p1517_p0), %v1171_v30, %v1170_v29  ;;  %v1172_v34 = vld [vmem:[%s2374_s7 + $0x20] sm:$0xff] (!%p1517_p0) }
  0xf2   : > { %1679 = vmatmul.mubr.f32.gmra.mrb[6].mxu1 %v794_v35  ;;  %1770 = vmatprep.subr.bf16.mxu0 (!%p1517_p0), %v1769_v28  ;;  %v1173_v35 = vld [vmem:[%s2374_s7 + $0x28] sm:$0xff] (!%p1517_p0)  ;;  %v1010_v23 = vld [vmem:[%s2145_s27 + $0x10] sm:$0xff] (!%p1517_p0) }
  0xf3   : > { %1667 = vmatmul.mubr.f32.gmra.mrb[6].mxu0 %v786_v36  ;;  %1817 = vmatprep.subr.bf16.mxu1 (!%p1517_p0), %v1769_v28  ;;  %v1051_v36 = vld [vmem:[%s2136_s2 + $0x58] sm:$0xff] (!%p1517_p0) }
  0xf4   : > { %1103 = vperm.xlu1 (!%p1517_p0), %1927, %v1049_v24   ;;  %1098 = vperm.xlu0 (!%p1517_p0), %1926, %v1048_v25  }
  0xf5   : > { %1772 = vmatpush3.bf16.msra.mxu0 (!%p1517_p0), %v1769_v28  ;;  %1825 = vmatpush3.bf16.msra.mxu1 (!%p1517_p0), %v1769_v28 }
  0xf6   : > { %1774 = vmatprep.subr.bf16.mxu0 (!%p1517_p0), %v1773_v33  ;;  %1818 = vmatprep.subr.bf16.mxu1 (!%p1517_p0), %v1773_v33 }
  0xf8   : > { %1108 = vperm.xlu1 (!%p1517_p0), %1927, %v1050_v31   ;;  %1068 = vperm.xlu0 (!%p1517_p0), %1926, %v1042_v32   ;;  %v1019_v31 = vld [vmem:[%s2145_s27 + $0x58] sm:$0xff] (!%p1517_p0) }
  0xf9   : > { %1776 = vmatpush3.bf16.msra.mxu0 (!%p1517_p0), %v1773_v33  ;;  %1826 = vmatpush3.bf16.msra.mxu1 (!%p1517_p0), %v1773_v33  ;;  %v1011_v33 = vld [vmem:[%s2145_s27 + $0x18] sm:$0xff] (!%p1517_p0) }
  0xfc   : > { %1113 = vperm.xlu1 (!%p1517_p0), %1927, %v1051_v36  }
 0x1ab   : > { %v1659_v39 = vpop.f32.mrb[0].mxu0 }
 0x1ac   : > { %v973_v40 = vadd.f32 %v1659_v39, %v796_v37  ;;  %v893_v41 = vpop.f32.mrb[1].mxu0  ;;  %v1043_v37 = vld [vmem:[%s2136_s2 + $0x18] sm:$0xff] (!%p1517_p0)  ;;  %v1174_v39 = vld [vmem:[%s2374_s7 + $0x30] sm:$0xff] (!%p1517_p0) }
 0x1ad   : > { %v972_v42 = vadd.f32 %v893_v41, %v795_v38  ;;  %v1777_v38 = vpack.c.bf16 (!%p1517_p0), %v1173_v35, %v1172_v34  ;;  %1073 = vperm.xlu0 (!%p1517_p0), %1926, %v1043_v37   ;;  %v1052_v41 = vld [vmem:[%s2136_s2 + $0x60] sm:$0xff] (!%p1517_p0) }
 0x1ae   : > { %989 = vst [vmem:[#allocation2 + $0x8] sm:$0xff] %v973_v40  ;;  %v1175_v40 = vld [vmem:[%s2374_s7 + $0x38] sm:$0xff] (!%p1517_p0)  ;;  %1118 = vperm.xlu1 (!%p1517_p0), %1927, %v1052_v41   ;;  %v1020_v41 = vld [vmem:[%s2145_s27 + $0x60] sm:$0xff] (!%p1517_p0) }
 0x1af   : > { %988 = vst [vmem:[#allocation2] sm:$0xff] %v972_v42  ;;  %v1671_v45 = vpop.f32.mrb[0].mxu1  ;;  %v1044_v42 = vld [vmem:[%s2136_s2 + $0x20] sm:$0xff] (!%p1517_p0)  ;;  %1778 = vmatprep.subr.bf16.mxu0 (!%p1517_p0), %v1777_v38  ;;  %1819 = vmatprep.subr.bf16.mxu1 (!%p1517_p0), %v1777_v38 }
 0x1b0   : > { %v981_v46 = vadd.f32 %v1671_v45, %v804_v43  ;;  %v933_v47 = vpop.f32.mrb[1].mxu1  ;;  %v1781_v43 = vpack.c.bf16 (!%p1517_p0), %v1175_v40, %v1174_v39  ;;  %v1177_v45 = vld [vmem:[%s2374_s7 + $0x48] sm:$0xff] (!%p1517_p0)  ;;  %1780 = vmatpush3.bf16.msra.mxu0 (!%p1517_p0), %v1777_v38  ;;  %1827 = vmatpush3.bf16.msra.mxu1 (!%p1517_p0), %v1777_v38 }
 0x1b1   : > { %v980_v48 = vadd.f32 %v933_v47, %v803_v44  ;;  %v1176_v44 = vld [vmem:[%s2374_s7 + $0x40] sm:$0xff] (!%p1517_p0)  ;;  %1078 = vperm.xlu0 (!%p1517_p0), %1926, %v1044_v42   ;;  %v1045_v47 = vld [vmem:[%s2136_s2 + $0x28] sm:$0xff] (!%p1517_p0) }
 0x1b2   : > { %997 = vst [vmem:[#allocation2 + $0x48] sm:$0xff] %v981_v46  ;;  %v1053_v46 = vld [vmem:[%s2136_s2 + $0x68] sm:$0xff] (!%p1517_p0)  ;;  %1782 = vmatprep.subr.bf16.mxu0 (!%p1517_p0), %v1781_v43  ;;  %1820 = vmatprep.subr.bf16.mxu1 (!%p1517_p0), %v1781_v43 }
 0x1b3   : > { %996 = vst [vmem:[#allocation2 + $0x40] sm:$0xff] %v980_v48  ;;  %v1785_v48 = vpack.c.bf16 (!%p1517_p0), %v1177_v45, %v1176_v44  ;;  %1123 = vperm.xlu1 (!%p1517_p0), %1927, %v1053_v46  }
 0x1b4   : > { %1784 = vmatpush3.bf16.msra.mxu0 (!%p1517_p0), %v1781_v43  ;;  %1828 = vmatpush3.bf16.msra.mxu1 (!%p1517_p0), %v1781_v43  ;;  %v1012_v43 = vld [vmem:[%s2145_s27 + $0x20] sm:$0xff] (!%p1517_p0) }
 0x1b5   : > { %v1674_v51 = vpop.f32.mrb[2].mxu1  ;;  %1083 = vperm.xlu0 (!%p1517_p0), %1926, %v1045_v47   ;;  %1786 = vmatprep.subr.bf16.mxu0 (!%p1517_p0), %v1785_v48 }
 0x1b6   : > { %v1662_v53 = vpop.f32.mrb[2].mxu0  ;;  %v983_v54 = vadd.f32 %v1674_v51, %v806_v8  ;;  %v943_v55 = vpop.f32.mrb[3].mxu1  ;;  %v1178_v8 = vld [vmem:[%s2374_s7 + $0x50] sm:$0xff] (!%p1517_p0)  ;;  %1821 = vmatprep.subr.bf16.mxu1 (!%p1517_p0), %v1785_v48 }
 0x1b7   : > { %v975_v56 = vadd.f32 %v1662_v53, %v798_v49  ;;  %v903_v57 = vpop.f32.mrb[3].mxu0  ;;  %v982_v59 = vadd.f32 %v943_v55, %v805_v50  ;;  %v1179_v49 = vld [vmem:[%s2374_s7 + $0x58] sm:$0xff] (!%p1517_p0)  ;;  %v1054_v50 = vld [vmem:[%s2136_s2 + $0x70] sm:$0xff] (!%p1517_p0)  ;;  %v1180_v53 = vld [vmem:[%s2374_s7 + $0x60] sm:$0xff] (!%p1517_p0) }
 0x1b8   : > { %999 = vst [vmem:[#allocation2 + $0x58] sm:$0xff] %v983_v54  ;;  %v974_v60 = vadd.f32 %v903_v57, %v797_v52  ;;  %v1046_v51 = vld [vmem:[%s2136_s2 + $0x30] sm:$0xff] (!%p1517_p0)  ;;  %v1789_v52 = vpack.c.bf16 (!%p1517_p0), %v1179_v49, %v1178_v8  ;;  %v1181_v54 = vld [vmem:[%s2374_s7 + $0x68] sm:$0xff] (!%p1517_p0)  ;;  %1788 = vmatpush3.bf16.msra.mxu0 (!%p1517_p0), %v1785_v48  ;;  %1829 = vmatpush3.bf16.msra.mxu1 (!%p1517_p0), %v1785_v48  ;;  %v1055_v55 = vld [vmem:[%s2136_s2 + $0x78] sm:$0xff] (!%p1517_p0) }
 0x1b9   : > { %991 = vst [vmem:[#allocation2 + $0x18] sm:$0xff] %v975_v56  ;;  %998 = vst [vmem:[#allocation2 + $0x50] sm:$0xff] %v982_v59  ;;  %1128 = vperm.xlu1 (!%p1517_p0), %1927, %v1054_v50   ;;  %1088 = vperm.xlu0 (!%p1517_p0), %1926, %v1046_v51   ;;  %v1047_v56 = vld [vmem:[%s2136_s2 + $0x38] sm:$0xff] (!%p1517_p0)  ;;  %v1793_v57 = vpack.c.bf16 (!%p1517_p0), %v1181_v54, %v1180_v53  ;;  %v1182_v59 = vld [vmem:[%s2374_s7 + $0x70] sm:$0xff] (!%p1517_p0) }
 0x1ba   : > { %990 = vst [vmem:[#allocation2 + $0x10] sm:$0xff] %v974_v60  ;;  %1790 = vmatprep.subr.bf16.mxu0 (!%p1517_p0), %v1789_v52  ;;  %1822 = vmatprep.subr.bf16.mxu1 (!%p1517_p0), %v1789_v52  ;;  %v1183_v60 = vld [vmem:[%s2374_s7 + $0x78] sm:$0xff] (!%p1517_p0)  ;;  %v1021_v50 = vld [vmem:[%s2145_s27 + $0x68] sm:$0xff] (!%p1517_p0) }
 0x1bc   : > { %1792 = vmatpush3.bf16.msra.mxu0 (!%p1517_p0), %v1789_v52  ;;  %1830 = vmatpush3.bf16.msra.mxu1 (!%p1517_p0), %v1789_v52  ;;  %v1013_v52 = vld [vmem:[%s2145_s27 + $0x28] sm:$0xff] (!%p1517_p0) }
 0x1bd   : > { %v1677_v0 = vpop.f32.mrb[4].mxu1  ;;  %1133 = vperm.xlu1 (!%p1517_p0), %1927, %v1055_v55   ;;  %1093 = vperm.xlu0 (!%p1517_p0), %1926, %v1047_v56  }
 0x1be   : > { %v1665_v2 = vpop.f32.mrb[4].mxu0  ;;  %v985_v3 = vadd.f32 %v1677_v0, %v808_v61  ;;  %v953_v4 = vpop.f32.mrb[5].mxu1  ;;  %v1797_v61 = vpack.c.bf16 (!%p1517_p0), %v1183_v60, %v1182_v59  ;;  %1794 = vmatprep.subr.bf16.mxu0 (!%p1517_p0), %v1793_v57  ;;  %1823 = vmatprep.subr.bf16.mxu1 (!%p1517_p0), %v1793_v57 }
 0x1bf   : > { %v977_v5 = vadd.f32 %v1665_v2, %v800_v62  ;;  %v913_v6 = vpop.f32.mrb[5].mxu0  ;;  %v984_v7 = vadd.f32 %v953_v4, %v807_v63  ;;  %v1025_v62 = vld [vmem:[#allocation2 + $0x8] sm:$0xff] (!%p1517_p0)  ;;  %v1024_v63 = vld [vmem:[#allocation2] sm:$0xff] (!%p1517_p0)  ;;  %v1064_v0 = vpop.permute.xlu1 (!%p1517_p0), %1063  ;;  %v1035_v26 = vld [vmem:[#allocation2 + $0x58] sm:$0xff] (!%p1517_p0) }
 0x1c0   : > { %1001 = vst [vmem:[#allocation2 + $0x68] sm:$0xff] %v985_v3  ;;  %v976_v9 = vadd.f32 %v913_v6, %v799_v1  ;;  %1796 = vmatpush3.bf16.msra.mxu0 (!%p1517_p0), %v1793_v57  ;;  %1831 = vmatpush3.bf16.msra.mxu1 (!%p1517_p0), %v1793_v57  ;;  %v1009_v1 = vld [vmem:[%s2145_s27 + $0x8] sm:$0xff] (!%p1517_p0)  ;;  %v1059_v2 = vpop.permute.xlu0 (!%p1517_p0), %1058  ;;  %v1008_v3 = vld [vmem:[%s2145_s27] sm:$0xff] (!%p1517_p0)  ;;  %v1137_v4 = vmul.f32 (!%p1517_p0), %v1064_v0, %v1025_v62  ;;  %v1027_v27 = vld [vmem:[#allocation2 + $0x18] sm:$0xff] (!%p1517_p0) }
 0x1c1   : > { %993 = vst [vmem:[#allocation2 + $0x28] sm:$0xff] %v977_v5  ;;  %1000 = vst [vmem:[#allocation2 + $0x60] sm:$0xff] %v984_v7  ;;  %1798 = vmatprep.subr.bf16.mxu0 (!%p1517_p0), %v1797_v61  ;;  %1824 = vmatprep.subr.bf16.mxu1 (!%p1517_p0), %v1797_v61  ;;  %v1136_v5 = vmul.f32 (!%p1517_p0), %v1059_v2, %v1024_v63  ;;  %v1033_v6 = vld [vmem:[#allocation2 + $0x48] sm:$0xff] (!%p1517_p0)  ;;  %v1032_v7 = vld [vmem:[#allocation2 + $0x40] sm:$0xff] (!%p1517_p0) }
 0x1c2   : > { %992 = vst [vmem:[#allocation2 + $0x20] sm:$0xff] %v976_v9  ;;  %v1153_v9 = vadd.f32 (!%p1517_p0), %v1137_v4, %v1009_v1  ;;  %v1014_v63 = vld [vmem:[%s2145_s27 + $0x30] sm:$0xff] (!%p1517_p0) }
 0x1c4   : > { %1007 = sbr.rel (%p1517_p0) target bundleno = 793 (0x319), region = 105  ;;  %1800 = vmatpush3.bf16.msra.mxu0 (!%p1517_p0), %v1797_v61  ;;  %1832 = vmatpush3.bf16.msra.mxu1 (!%p1517_p0), %v1797_v61  ;;  %v1022_v61 = vld [vmem:[%s2145_s27 + $0x70] sm:$0xff] (!%p1517_p0) }
 0x1c5   : > { %v1680_v13 = vpop.f32.mrb[6].mxu1 }
 0x1c6   : > { %v1668_v15 = vpop.f32.mrb[6].mxu0  ;;  %v987_v16 = vadd.f32 %v1680_v13, %v810_v10  ;;  %v963_v58 = vpop.f32.mrb[7].mxu1  ;;  %v1152_v10 = vadd.f32 (!%p1517_p0), %v1136_v5, %v1008_v3 }
 0x1c7   : > { %v979_v17 = vadd.f32 %v1668_v15, %v802_v11  ;;  %v923_v18 = vpop.f32.mrb[7].mxu0  ;;  %v986_v19 = vadd.f32 %v963_v58, %v809_v12  ;;  %v1104_v11 = vpop.permute.xlu1 (!%p1517_p0), %1103  ;;  %v1017_v12 = vld [vmem:[%s2145_s27 + $0x48] sm:$0xff] (!%p1517_p0)  ;;  %v1034_v58 = vld [vmem:[#allocation2 + $0x50] sm:$0xff] (!%p1517_p0) }
 0x1c8   : > { %1003 = vst [vmem:[#allocation2 + $0x78] sm:$0xff] %v987_v16  ;;  %v978_v20 = vadd.f32 %v923_v18, %v801_v14  ;;  %v1099_v13 = vpop.permute.xlu0 (!%p1517_p0), %1098  ;;  %v1016_v14 = vld [vmem:[%s2145_s27 + $0x40] sm:$0xff] (!%p1517_p0)  ;;  %v1145_v15 = vmul.f32 (!%p1517_p0), %v1104_v11, %v1033_v6  ;;  %1713 = vmatprep.mubr.f32.mxu0 (!%p1517_p0), %v1152_v10  ;;  %v1037_v46 = vld [vmem:[#allocation2 + $0x68] sm:$0xff] (!%p1517_p0)  ;;  %v1015_v10 = vld [vmem:[%s2145_s27 + $0x38] sm:$0xff] (!%p1517_p0) }
 0x1c9   : > { %995 = vst [vmem:[#allocation2 + $0x38] sm:$0xff] %v979_v17  ;;  %1002 = vst [vmem:[#allocation2 + $0x70] sm:$0xff] %v986_v19  ;;  %v1144_v16 = vmul.f32 (!%p1517_p0), %v1099_v13, %v1032_v7  ;;  %1714 = vmatmul.mubr.f32.vlgmr.msra.gmra.mrb[0].mxu0 (!%p1517_p0), %v1153_v9  ;;  %v1026_v17 = vld [vmem:[#allocation2 + $0x10] sm:$0xff] (!%p1517_p0)  ;;  %v1036_v36 = vld [vmem:[#allocation2 + $0x60] sm:$0xff] (!%p1517_p0) }
 0x1ca   : > { %994 = vst [vmem:[#allocation2 + $0x30] sm:$0xff] %v978_v20  ;;  %v1161_v18 = vadd.f32 (!%p1517_p0), %v1145_v15, %v1017_v12  ;;  %v1028_v37 = vld [vmem:[#allocation2 + $0x20] sm:$0xff] (!%p1517_p0)  ;;  %v1029_v47 = vld [vmem:[#allocation2 + $0x28] sm:$0xff] (!%p1517_p0)  ;;  %v1023_v7 = vld [vmem:[%s2145_s27 + $0x78] sm:$0xff] (!%p1517_p0) }
 0x1cb   : > { %v1160_v19 = vadd.f32 %v1144_v16, %v1016_v14  ;;  %v1109_v20 = vpop.permute.xlu1 %1108  ;;  %v1518_v15 = vld [vmem:[%s2375_s8] ss:$0 sm:$0xff] }
 0x1cc   : > { %v1069_v22 = vpop.permute.xlu0 %1068  ;;  %v1146_v24 = vmul.f32 %v1109_v20, %v1034_v58 }
 0x1cd   : > { %v1138_v25 = vmul.f32 %v1069_v22, %v1026_v17  ;;  %1725 = vmatprep.mubr.f32.mxu1 %v1160_v19 }
 0x1ce   : > { %1726 = vmatmul.mubr.f32.vlgmr.msra.gmra.mrb[0].mxu1 %v1161_v18  ;;  %v1162_v28 = vadd.f32 %v1146_v24, %v1018_v21 }
 0x1cf   : > { %v1154_v29 = vadd.f32 %v1138_v25, %v1010_v23  ;;  %v1114_v30 = vpop.permute.xlu1 %1113  ;;  %v1039_v2 = vld [vmem:[#allocation2 + $0x78] sm:$0xff] }
 0x1d0   : > { %v1147_v34 = vmul.f32 %v1114_v30, %v1035_v26  ;;  %1728 = vmatprep.mubr.f32.mxu1 %v1162_v28  ;;  %v1038_v55 = vld [vmem:[#allocation2 + $0x70] sm:$0xff]  ;;  %v1031_v3 = vld [vmem:[#allocation2 + $0x38] sm:$0xff] }
 0x1d1   : > { %1716 = vmatprep.mubr.f32.mxu0 %v1154_v29  ;;  %v1030_v56 = vld [vmem:[#allocation2 + $0x30] sm:$0xff] }
 0x1d2   : > { %v1163_v38 = vadd.f32 %v1147_v34, %v1019_v31 }
 0x1d4   : > { %1729 = vmatmul.mubr.f32.gmra.mrb[2].mxu1 %v1163_v38 }
 0x22c   : > { %v1074_v32 = vpop.permute.xlu0 %1073 }
 0x22d   : > { %v1139_v35 = vmul.f32 %v1074_v32, %v1027_v27  ;;  %v1119_v40 = vpop.permute.xlu1 %1118 }
 0x22e   : > { %v1148_v44 = vmul.f32 %v1119_v40, %v1036_v36 }
 0x22f   : > { %v1155_v39 = vadd.f32 %v1139_v35, %v1011_v33 }
 0x230   : > { %v1079_v42 = vpop.permute.xlu0 %1078  ;;  %v1164_v48 = vadd.f32 %v1148_v44, %v1020_v41 }
 0x231   : > { %v1140_v45 = vmul.f32 %v1079_v42, %v1028_v37  ;;  %1717 = vmatmul.mubr.f32.gmra.mrb[2].mxu0 %v1155_v39 }
 0x232   : > { %v1124_v49 = vpop.permute.xlu1 %1123  ;;  %1731 = vmatprep.mubr.f32.mxu1 %v1164_v48 }
 0x233   : > { %v1156_v8 = vadd.f32 %v1140_v45, %v1012_v43  ;;  %v1149_v53 = vmul.f32 %v1124_v49, %v1037_v46 }
 0x234   : > { %v1084_v51 = vpop.permute.xlu0 %1083 }
 0x235   : > { %v1141_v54 = vmul.f32 %v1084_v51, %v1029_v47  ;;  %1719 = vmatprep.mubr.f32.mxu0 %v1156_v8  ;;  %v1165_v57 = vadd.f32 %v1149_v53, %v1021_v50 }
 0x237   : > { %v1157_v59 = vadd.f32 %v1141_v54, %v1013_v52  ;;  %1732 = vmatmul.mubr.f32.gmra.mrb[4].mxu1 %v1165_v57 }
 0x238   : > { %v1129_v60 = vpop.permute.xlu1 %1128  ;;  %v1089_v62 = vpop.permute.xlu0 %1088 }
 0x239   : > { %v1150_v0 = vmul.f32 %v1129_v60, %v1038_v55  ;;  %v1142_v1 = vmul.f32 %v1089_v62, %v1030_v56  ;;  %1720 = vmatmul.mubr.f32.gmra.mrb[4].mxu0 %v1157_v59 }
 0x23b   : > { %v1166_v4 = vadd.f32 %v1150_v0, %v1022_v61  ;;  %v1158_v5 = vadd.f32 %v1142_v1, %v1014_v63 }
 0x23c   : > { %v1134_v6 = vpop.permute.xlu1 %1133  ;;  %v1094_v9 = vpop.permute.xlu0 %1093 }
 0x23d   : > { %v1151_v11 = vmul.f32 %v1134_v6, %v1039_v2  ;;  %v1143_v12 = vmul.f32 %v1094_v9, %v1031_v3  ;;  %1722 = vmatprep.mubr.f32.mxu0 %v1158_v5  ;;  %1734 = vmatprep.mubr.f32.mxu1 %v1166_v4 }
 0x23f   : > { %v1167_v13 = vadd.f32 %v1151_v11, %v1023_v7  ;;  %v1159_v14 = vadd.f32 %v1143_v12, %v1015_v10 }
 0x241   : > { %1723 = vmatmul.mubr.f32.gmra.mrb[6].mxu0 %v1159_v14  ;;  %1735 = vmatmul.mubr.f32.gmra.mrb[6].mxu1 %v1167_v13 }
 0x29c   : > { %v1715_v16 = vpop.f32.mrb[0].mxu0 }
 0x29d   : > { %v1263_v58 = vadd.f32 %v1715_v16, %v1518_v15  ;;  %v1257_v17 = vpop.f32.mrb[1].mxu0 }
 0x29e   : > { %v1258_v18 = vadd.f32 %v1518_v15, %v1257_v17 }
 0x29f   : > { %1337 = vst [vmem:[%s2150_s18 + $0x8] sm:$0xff] %v1263_v58 }
 0x2a0   : > { %1336 = vst [vmem:[%s2150_s18] sm:$0xff] %v1258_v18 }
 0x2a1   : > { %v1727_v19 = vpop.f32.mrb[0].mxu1 }
 0x2a2   : > { %v1303_v20 = vadd.f32 %v1727_v19, %v1518_v15  ;;  %v1297_v21 = vpop.f32.mrb[1].mxu1 }
 0x2a3   : > { %v1298_v22 = vadd.f32 %v1518_v15, %v1297_v21 }
 0x2a4   : > { %1345 = vst [vmem:[%s2150_s18 + $0x48] sm:$0xff] %v1303_v20 }
 0x2a5   : > { %1344 = vst [vmem:[%s2150_s18 + $0x40] sm:$0xff] %v1298_v22 }
 0x2a7   : > { %v1730_v24 = vpop.f32.mrb[2].mxu1 }
 0x2a8   : > { %v1313_v26 = vadd.f32 %v1730_v24, %v1518_v15  ;;  %v1307_v28 = vpop.f32.mrb[3].mxu1 }
 0x2a9   : > { %v1308_v30 = vadd.f32 %v1518_v15, %v1307_v28 }
 0x2aa   : > { %1347 = vst [vmem:[%s2150_s18 + $0x58] sm:$0xff] %v1313_v26 }
 0x2ab   : > { %1346 = vst [vmem:[%s2150_s18 + $0x50] sm:$0xff] %v1308_v30 }
 0x304   : > { %v1718_v23 = vpop.f32.mrb[2].mxu0 }
 0x305   : > { %v1273_v25 = vadd.f32 %v1718_v23, %v1518_v15  ;;  %v1267_v27 = vpop.f32.mrb[3].mxu0 }
 0x306   : > { %v1268_v29 = vadd.f32 %v1518_v15, %v1267_v27 }
 0x307   : > { %1339 = vst [vmem:[%s2150_s18 + $0x18] sm:$0xff] %v1273_v25 }
 0x308   : > { %1338 = vst [vmem:[%s2150_s18 + $0x10] sm:$0xff] %v1268_v29 }
 0x30a   : > { %v1733_v32 = vpop.f32.mrb[4].mxu1 }
 0x30b   : > { %v1323_v34 = vadd.f32 %v1733_v32, %v1518_v15  ;;  %v1317_v36 = vpop.f32.mrb[5].mxu1 }
 0x30c   : > { %v1721_v31 = vpop.f32.mrb[4].mxu0  ;;  %v1318_v38 = vadd.f32 %v1518_v15, %v1317_v36 }
 0x30d   : > { %v1283_v33 = vadd.f32 %v1721_v31, %v1518_v15  ;;  %v1277_v35 = vpop.f32.mrb[5].mxu0  ;;  %1349 = vst [vmem:[%s2150_s18 + $0x68] sm:$0xff] %v1323_v34 }
 0x30e   : > { %v1278_v37 = vadd.f32 %v1518_v15, %v1277_v35  ;;  %1348 = vst [vmem:[%s2150_s18 + $0x60] sm:$0xff] %v1318_v38 }
 0x30f   : > { %1341 = vst [vmem:[%s2150_s18 + $0x28] sm:$0xff] %v1283_v33 }
 0x310   : > { %1340 = vst [vmem:[%s2150_s18 + $0x20] sm:$0xff] %v1278_v37 }
 0x314   : > { %v1724_v39 = vpop.f32.mrb[6].mxu0  ;;  %v1736_v40 = vpop.f32.mrb[6].mxu1 }
 0x315   : > { %v1293_v41 = vadd.f32 %v1724_v39, %v1518_v15  ;;  %v1333_v42 = vadd.f32 %v1736_v40, %v1518_v15  ;;  %v1287_v43 = vpop.f32.mrb[7].mxu0  ;;  %v1327_v44 = vpop.f32.mrb[7].mxu1 }
 0x316   : > { %v1288_v45 = vadd.f32 %v1518_v15, %v1287_v43  ;;  %v1328_v46 = vadd.f32 %v1518_v15, %v1327_v44 }
 0x317   : > { %1343 = vst [vmem:[%s2150_s18 + $0x38] sm:$0xff] %v1293_v41  ;;  %1351 = vst [vmem:[%s2150_s18 + $0x78] sm:$0xff] %v1333_v42 }
 0x318   : > { %1342 = vst [vmem:[%s2150_s18 + $0x30] sm:$0xff] %v1288_v45  ;;  %1350 = vst [vmem:[%s2150_s18 + $0x70] sm:$0xff] %v1328_v46 }
 0x319 PF: > { %s19_s15 = sadd.s32 1, %s1982_s15   ;;  %s2390_s11 = sld [smem:[#allocation4_spill]] }
 0x31a   : > { %p16_p1 = scmp.ge.s32.totalorder %s19_s15, 6   ;;  %s2391_s12 = sld [smem:[#allocation5_spill]] }
 0x31b   : > { %s2392_s13 = sld [smem:[#allocation6_spill]]  ;;  %s2393_s14 = sld [smem:[#allocation7_spill]] }
 0x31c   : > { %s2394_s30 = smov %s1962_s10  ;;  %s2395_s10 = smov %s2088_s22 }
 0x31d   :  { %18 = sbr.rel (!%p16_p1) target bundleno = 7 (0x7), region = 158 }

</bundles_post_ra>
